<compile_context>
chip_gen: v6e
topology: v6e:2x2x1
jax: 0.10.0
libtpu: 0.0.40
codegen_flags: <defaults>
</compile_context>

<pallas_src>
import math
import functools

import jax
import jax.numpy as jnp
from jax.experimental import pallas as pl
from jax.experimental.pallas import tpu as pltpu

EPS = 1e-5  # PyTorch LayerNorm default eps


# ----------------------------------------------------------------------------
# Kernel
# ----------------------------------------------------------------------------
def _layernorm(x, gamma, beta):
    mean = jnp.mean(x, axis=-1, keepdims=True)
    var = jnp.mean((x - mean) ** 2, axis=-1, keepdims=True)   # biased, like PyTorch
    return (x - mean) * jax.lax.rsqrt(var + EPS) * gamma + beta


def fused_transformer_kernel(x_ref,
                             wqkv_ref, bqkv_ref, wo_ref, bo_ref,
                             w1_ref, b1_ref, w2_ref, b2_ref,
                             g1_ref, be1_ref, g2_ref, be2_ref,
                             wout_ref, bout_ref,
                             out_ref, act_ref,
                             *, num_heads, seq_pad, seq_real, seqs_per_block,
                             weights_resident):
    """Grid = (row_blocks, num_layers).  One grid step = one encoder layer on
    one row block; the activation stays resident in VMEM scratch across layers."""
    H, S, Bt = num_heads, seq_pad, seqs_per_block
    R, E = act_ref.shape
    dh = E // H
    layer = pl.program_id(1)
    mxu = wqkv_ref.dtype               # MXU operand dtype (bf16 or f32)

    if weights_resident:
        # All L layers' weights were DMA'd once for the whole call (constant
        # index_map); slice out the current layer's slab.
        def W(ref):
            return ref[layer]
    else:
        def W(ref):
            return ref[...]

    # Load the (PE-added) input only once per row block.
    @pl.when(layer == 0)
    def _init():
        act_ref[...] = x_ref[...]

    x = act_ref[...]                                          # (R, E) f32

    # ---- fused QKV projection: ONE lane-dense matmul (scale folded into Q) ----
    qkv = (jnp.dot(x.astype(mxu), W(wqkv_ref),
                   preferred_element_type=jnp.float32) + W(bqkv_ref))   # (R, 3E)

    if seq_real != seq_pad:          # mask padded key positions (host padded S)
        key_is_pad = (jax.lax.broadcasted_iota(jnp.int32, (Bt, S, S), 2) >= seq_real)
    else:
        key_is_pad = None

    # ---- attention, batched over the Bt sequences of this row block ----
    ctx_heads = []
    for h in range(H):                                        # static, small
        qh = qkv[:, h * dh:(h + 1) * dh].reshape(Bt, S, dh).astype(mxu)
        kh = qkv[:, E + h * dh:E + (h + 1) * dh].reshape(Bt, S, dh).astype(mxu)
        vh = qkv[:, 2 * E + h * dh:2 * E + (h + 1) * dh].reshape(Bt, S, dh).astype(mxu)
        s = jnp.einsum('bqd,bkd->bqk', qh, kh,
                       preferred_element_type=jnp.float32)    # (Bt, S, S)
        if key_is_pad is not None:
            s = jnp.where(key_is_pad, -1e30, s)
        s = s - jnp.max(s, axis=-1, keepdims=True)
        p = jnp.exp(s)
        p = p * pl.reciprocal(jnp.sum(p, axis=-1, keepdims=True), approx=True)
        ctx = jnp.einsum('bqk,bkd->bqd', p.astype(mxu), vh,
                         preferred_element_type=jnp.float32)  # (Bt, S, dh)
        ctx_heads.append(ctx.reshape(R, dh))
    ctx_all = ctx_heads[0] if H == 1 else jnp.concatenate(ctx_heads, axis=-1)  # (R, E)

    # single output projection: contraction depth E, lane-dense output
    attn = (jnp.dot(ctx_all.astype(mxu), W(wo_ref),
                    preferred_element_type=jnp.float32) + W(bo_ref))
    x = _layernorm(x + attn, W(g1_ref), W(be1_ref))           # residual + norm1

    # ---- feed forward (relu), all rows of the block at once ----
    h1 = jnp.maximum(
        jnp.dot(x.astype(mxu), W(w1_ref), preferred_element_type=jnp.float32)
        + W(b1_ref), 0.0)
    ff = (jnp.dot(h1.astype(mxu), W(w2_ref), preferred_element_type=jnp.float32)
          + W(b2_ref))
    x = _layernorm(x + ff, W(g2_ref), W(be2_ref))             # residual + norm2

    act_ref[...] = x                                          # carry to next layer

    # ---- fused final projection on the LAST (real) token of each sequence ----
    @pl.when(layer == pl.num_programs(1) - 1)
    def _finalize():
        last = act_ref[pl.ds(seq_real - 1, Bt, stride=S), :]  # (Bt, E) strided load
        out_ref[...] = (jnp.dot(last.astype(mxu), wout_ref[...],
                                preferred_element_type=jnp.float32)
                        + bout_ref[...])


# ----------------------------------------------------------------------------
# Host-side parameter packing (one time; no .T / scaling / splits in-kernel)
# ----------------------------------------------------------------------------
def pack_params(params, num_heads, mxu_dtype=jnp.bfloat16):
    E = params["w_out"].shape[0]
    assert E % num_heads == 0
    scale = 1.0 / math.sqrt(E // num_heads)
    f32 = jnp.float32

    def per_layer(layer):
        (wqkv, bqkv, wo, bo, w1, b1, w2, b2, g1, be1, g2, be2) = layer
        wqkv_t = wqkv.T.at[:, :E].multiply(scale)    # (E, 3E); Q columns pre-scaled
        bqkv_s = bqkv.at[:E].multiply(scale)
        return dict(
            wqkv=wqkv_t.astype(mxu_dtype),
            bqkv=bqkv_s.reshape(1, 3 * E).astype(f32),
            wo=wo.T.astype(mxu_dtype), bo=bo.reshape(1, E).astype(f32),
            w1=w1.T.astype(mxu_dtype), b1=b1.reshape(1, -1).astype(f32),
            w2=w2.T.astype(mxu_dtype), b2=b2.reshape(1, E).astype(f32),
            g1=g1.reshape(1, E).astype(f32), be1=be1.reshape(1, E).astype(f32),
            g2=g2.reshape(1, E).astype(f32), be2=be2.reshape(1, E).astype(f32),
        )

    per = [per_layer(l) for l in params["layers"]]
    packed = {k: jnp.stack([p[k] for p in per], axis=0) for k in per[0]}
    packed["pe"] = params["pe"].astype(f32)
    packed["wout"] = params["w_out"].T.astype(mxu_dtype)
    packed["bout"] = params["b_out"].reshape(1, E).astype(f32)
    return packed


# ----------------------------------------------------------------------------
# Wrapper
# ----------------------------------------------------------------------------
_STACKED = ("wqkv", "bqkv", "wo", "bo", "w1", "b1", "w2", "b2",
            "g1", "be1", "g2", "be2")


def _pick_seqs_per_block(batch, seq_pad, target_rows=512):
    """Sequences per grid program.  Candidates keep the (Bt, E) output block
    tile-legal (Bt % 8 == 0) AND give n_rb >= 2 (feeds both TensorCores on
    v7x); otherwise the whole batch goes in one block (full-array block is
    always tile-legal)."""
    cands = [bt for bt in range(8, batch, 8) if batch % bt == 0]
    if not cands:
        return batch
    target_seqs = max(1, target_rows // seq_pad)
    fit = [bt for bt in cands if bt <= target_seqs]
    return max(fit) if fit else min(cands)


@functools.partial(jax.jit, static_argnums=(2,))
def history_transformer_forward(x, packed, num_heads):
    B, S, E = x.shape
    H = num_heads
    dh = E // H
    L = packed["wqkv"].shape[0]
    D_ff = packed["w1"].shape[-1]

    # Positional encoding, pad seq dim to a multiple of 8 (pad keys masked in
    # the kernel), flatten to (B*S_pad, E): trivial glue outside the kernel.
    S_pad = -(-S // 8) * 8
    x_pe = (x + packed["pe"][:S][None, :, :]).astype(jnp.float32)
    if S_pad != S:
        x_pe = jnp.pad(x_pe, ((0, 0), (0, S_pad - S), (0, 0)))
    x_flat = x_pe.reshape(B * S_pad, E)

    Bt = _pick_seqs_per_block(B, S_pad)       # sequences per grid program
    n_rb = B // Bt
    R = Bt * S_pad                            # matmul rows per program

    # ---- VMEM budgeting: weight residency decision + explicit scoped limit ----
    w_layer_bytes = sum(math.prod(packed[k].shape[1:]) * packed[k].dtype.itemsize
                        for k in _STACKED)
    w_out_bytes = (packed["wout"].size * packed["wout"].dtype.itemsize
                   + packed["bout"].size * packed["bout"].dtype.itemsize)
    w_total_bytes = L * w_layer_bytes + w_out_bytes
    weights_resident = 2 * w_total_bytes <= (24 << 20)   # fits v7x's 64 MiB VMEM

    act_blk = R * E * 4
    vmem_needed = (3 * act_blk                   # double-buffered input + scratch
                   + 2 * Bt * E * 4              # output block
                   + R * (3 * E + D_ff) * 4      # qkv / ffn intermediates
                   + (2 * w_total_bytes if weights_resident
                      else 2 * w_layer_bytes + w_out_bytes))
    vmem_limit = int(min(max(2 * vmem_needed, 32 << 20), 64 << 20))

    # ---- BlockSpecs ----
    def wspec(name):
        shape = packed[name].shape
        if weights_resident:
            nd = len(shape)
            return pl.BlockSpec(shape, lambda r, l, _n=nd: (0,) * _n)     # DMA once
        nd = len(shape) - 1
        return pl.BlockSpec((None,) + shape[1:],
                            lambda r, l, _n=nd: (l,) + (0,) * _n)         # stream / layer

    in_specs = ([pl.BlockSpec((R, E), lambda r, l: (r, 0))]      # activations
                + [wspec(k) for k in _STACKED]                    # per-layer weights
                + [pl.BlockSpec((E, E), lambda r, l: (0, 0)),     # w_out (resident)
                   pl.BlockSpec((1, E), lambda r, l: (0, 0))])    # b_out

    grid_spec = pltpu.PrefetchScalarGridSpec(
        num_scalar_prefetch=0,
        grid=(n_rb, L),                          # layers innermost ("arbitrary")
        in_specs=in_specs,
        out_specs=pl.BlockSpec((Bt, E), lambda r, l: (r, 0)),
        scratch_shapes=[pltpu.VMEM((R, E), jnp.float32)],
    )

    # Advisory cost estimate so XLA schedules surrounding glue around the kernel.
    BS = B * S_pad
    flops = L * (2 * BS * E * 3 * E + 4 * B * H * S_pad * S_pad * dh
                 + 2 * BS * E * E + 4 * BS * E * D_ff) + 2 * B * E * E
    transcendentals = L * (B * H * S_pad * S_pad + 2 * BS)
    bytes_accessed = (x_flat.size * 4 + B * E * 4
                      + (w_total_bytes if weights_resident
                         else n_rb * L * w_layer_bytes + w_out_bytes))

    kernel = functools.partial(
        fused_transformer_kernel,
        num_heads=H, seq_pad=S_pad, seq_real=S, seqs_per_block=Bt,
        weights_resident=weights_resident)

    return pl.pallas_call(
        kernel,
        grid_spec=grid_spec,
        out_shape=jax.ShapeDtypeStruct((B, E), jnp.float32),
        compiler_params=pltpu.CompilerParams(
            dimension_semantics=("parallel", "arbitrary"),   # row blocks -> both TCs
            vmem_limit_bytes=vmem_limit),
        cost_estimate=pl.CostEstimate(flops=int(flops),
                                      transcendentals=int(transcendentals),
                                      bytes_accessed=int(bytes_accessed)),
    )(x_flat,
      *[packed[k] for k in _STACKED],
      packed["wout"], packed["bout"])


# ----------------------------------------------------------------------------
# Parameters (PyTorch-convention shapes) + positional encoding
# ----------------------------------------------------------------------------
def make_positional_encoding(max_len, d_model):
    position = jnp.arange(max_len, dtype=jnp.float32)[:, None]
    div_term = jnp.exp(jnp.arange(0, d_model, 2, dtype=jnp.float32)
                       * (-math.log(10000.0) / d_model))
    pe = jnp.zeros((max_len, d_model), jnp.float32)
    pe = pe.at[:, 0::2].set(jnp.sin(position * div_term))
    pe = pe.at[:, 1::2].set(jnp.cos(position * div_term))
    return pe


def init_params(key, embedding_dim, num_layers, max_len=64):
    E = embedding_dim
    params = {"pe": make_positional_encoding(max_len, E), "layers": []}
    for _ in range(num_layers):
        keys = jax.random.split(key, 7)
        key = keys[0]
        layer = (
            jax.random.normal(keys[1], (3 * E, E), jnp.float32) * 0.05,   # in_proj_weight
            jax.random.normal(keys[2], (3 * E,), jnp.float32) * 0.05,     # in_proj_bias
            jax.random.normal(keys[3], (E, E), jnp.float32) * 0.05,       # out_proj.weight
            jnp.zeros((E,), jnp.float32),                                 # out_proj.bias
            jax.random.normal(keys[4], (4 * E, E), jnp.float32) * 0.05,   # linear1.weight
            jnp.zeros((4 * E,), jnp.float32),                             # linear1.bias
            jax.random.normal(keys[5], (E, 4 * E), jnp.float32) * 0.05,   # linear2.weight
            jnp.zeros((E,), jnp.float32),                                 # linear2.bias
            jnp.ones((E,), jnp.float32),                                  # norm1.weight
            jnp.zeros((E,), jnp.float32),                                 # norm1.bias
            jnp.ones((E,), jnp.float32),                                  # norm2.weight
            jnp.zeros((E,), jnp.float32),                                 # norm2.bias
        )
        params["layers"].append(layer)
    k1, k2 = jax.random.split(key)
    params["w_out"] = jax.random.normal(k1, (E, E), jnp.float32) * 0.05
    params["b_out"] = jax.random.normal(k2, (E,), jnp.float32) * 0.05
    return params


# ----------------------------------------------------------------------------
# Pure-JAX reference (mirrors the PyTorch forward, eval mode)
# ----------------------------------------------------------------------------
def _ref_layer(x, p, num_heads):
    (wqkv, bqkv, wo, bo, w1, b1, w2, b2, g1, be1, g2, be2) = p
    B, S, E = x.shape
    dh = E // num_heads
    qkv = x @ wqkv.T + bqkv
    q, k, v = qkv[..., :E], qkv[..., E:2 * E], qkv[..., 2 * E:]
    q = q.reshape(B, S, num_heads, dh).transpose(0, 2, 1, 3)
    k = k.reshape(B, S, num_heads, dh).transpose(0, 2, 1, 3)
    v = v.reshape(B, S, num_heads, dh).transpose(0, 2, 1, 3)
    s = jnp.einsum("bhqd,bhkd->bhqk", q, k) / math.sqrt(dh)
    p_attn = jax.nn.softmax(s, axis=-1)
    attn = jnp.einsum("bhqk,bhkd->bhqd", p_attn, v).transpose(0, 2, 1, 3).reshape(B, S, E)
    attn = attn @ wo.T + bo

    def ln(y, g, b):
        m = y.mean(-1, keepdims=True)
        var = ((y - m) ** 2).mean(-1, keepdims=True)
        return (y - m) / jnp.sqrt(var + EPS) * g + b

    x = ln(x + attn, g1, be1)
    ff = jnp.maximum(x @ w1.T + b1, 0.0) @ w2.T + b2
    return ln(x + ff, g2, be2)


def reference_forward(x, params, num_heads):
    S = x.shape[1]
    x = x + params["pe"][:S][None, :, :]
    for layer in params["layers"]:
        x = _ref_layer(x, layer, num_heads)
    out = x @ params["w_out"].T + params["b_out"]
    return out[:, -1, :]


# ----------------------------------------------------------------------------
if __name__ == "__main__":
    B, S, E = 2, 8, 32
    num_heads, num_layers = 4, 2

    key = jax.random.PRNGKey(0)
    k_in, k_par = jax.random.split(key)
    x = jax.random.normal(k_in, (B, S, E), jnp.float32)
    params = init_params(k_par, E, num_layers)
    ref = reference_forward(x, params, num_heads)

    # 1) f32 MXU operands: structural parity with the PyTorch forward.
    out_f32 = history_transformer_forward(
        x, pack_params(params, num_heads, jnp.float32), num_heads)
    out_f32 = jax.block_until_ready(out_f32)
    assert out_f32.shape == (B, E), out_f32.shape
    err32 = float(jnp.max(jnp.abs(out_f32 - ref)))
    assert jnp.allclose(out_f32, ref, rtol=5e-3, atol=5e-3), err32

    # 2) bf16 MXU operands (the deployed v6e/v7x config): looser tolerance
    #    (bf16 matmul inputs + approx-EUP reciprocal in softmax).
    out_bf16 = history_transformer_forward(
        x, pack_params(params, num_heads, jnp.bfloat16), num_heads)
    out_bf16 = jax.block_until_ready(out_bf16)
    err16 = float(jnp.max(jnp.abs(out_bf16 - ref)))
    assert jnp.allclose(out_bf16, ref, rtol=3e-2, atol=3e-2), err16

    print("KERNEL_OK")
</pallas_src>

<mosaic_0001>
module attributes {stable_mosaic.version = 11 : i64} {
  func.func @fused_transformer_kernel(%arg0: i32, %arg1: i32, %arg2: memref<16x32xf32, #tpu.memory_space<vmem>>, %arg3: memref<2x32x96xf32, #tpu.memory_space<vmem>>, %arg4: memref<2x1x96xf32, #tpu.memory_space<vmem>>, %arg5: memref<2x32x32xf32, #tpu.memory_space<vmem>>, %arg6: memref<2x1x32xf32, #tpu.memory_space<vmem>>, %arg7: memref<2x32x128xf32, #tpu.memory_space<vmem>>, %arg8: memref<2x1x128xf32, #tpu.memory_space<vmem>>, %arg9: memref<2x128x32xf32, #tpu.memory_space<vmem>>, %arg10: memref<2x1x32xf32, #tpu.memory_space<vmem>>, %arg11: memref<2x1x32xf32, #tpu.memory_space<vmem>>, %arg12: memref<2x1x32xf32, #tpu.memory_space<vmem>>, %arg13: memref<2x1x32xf32, #tpu.memory_space<vmem>>, %arg14: memref<2x1x32xf32, #tpu.memory_space<vmem>>, %arg15: memref<32x32xf32, #tpu.memory_space<vmem>>, %arg16: memref<1x32xf32, #tpu.memory_space<vmem>>, %arg17: memref<2x32xf32, #tpu.memory_space<vmem>>, %arg18: memref<16x32xf32, #tpu.memory_space<vmem>>) attributes {dimension_semantics = [#tpu.dimension_semantics<parallel>, #tpu.dimension_semantics<arbitrary>], iteration_bounds = array<i64: 1, 2>, scalar_prefetch = 0 : i64, scratch_operands = 1 : i64, tpu.core_type = #tpu.core_type<tc>, window_params = [{transform_indices = @transform_0, window_bounds = array<i64: 16, 32>}, {pipeline_mode = #tpu.pipeline_mode<synchronous>, transform_indices = @transform_1, window_bounds = array<i64: 2, 32, 96>}, {pipeline_mode = #tpu.pipeline_mode<synchronous>, transform_indices = @transform_2, window_bounds = array<i64: 2, 1, 96>}, {pipeline_mode = #tpu.pipeline_mode<synchronous>, transform_indices = @transform_3, window_bounds = array<i64: 2, 32, 32>}, {pipeline_mode = #tpu.pipeline_mode<synchronous>, transform_indices = @transform_4, window_bounds = array<i64: 2, 1, 32>}, {pipeline_mode = #tpu.pipeline_mode<synchronous>, transform_indices = @transform_5, window_bounds = array<i64: 2, 32, 128>}, {pipeline_mode = #tpu.pipeline_mode<synchronous>, transform_indices = @transform_6, window_bounds = array<i64: 2, 1, 128>}, {pipeline_mode = #tpu.pipeline_mode<synchronous>, transform_indices = @transform_7, window_bounds = array<i64: 2, 128, 32>}, {pipeline_mode = #tpu.pipeline_mode<synchronous>, transform_indices = @transform_8, window_bounds = array<i64: 2, 1, 32>}, {pipeline_mode = #tpu.pipeline_mode<synchronous>, transform_indices = @transform_9, window_bounds = array<i64: 2, 1, 32>}, {pipeline_mode = #tpu.pipeline_mode<synchronous>, transform_indices = @transform_10, window_bounds = array<i64: 2, 1, 32>}, {pipeline_mode = #tpu.pipeline_mode<synchronous>, transform_indices = @transform_11, window_bounds = array<i64: 2, 1, 32>}, {pipeline_mode = #tpu.pipeline_mode<synchronous>, transform_indices = @transform_12, window_bounds = array<i64: 2, 1, 32>}, {pipeline_mode = #tpu.pipeline_mode<synchronous>, transform_indices = @transform_13, window_bounds = array<i64: 32, 32>}, {pipeline_mode = #tpu.pipeline_mode<synchronous>, transform_indices = @transform_14, window_bounds = array<i64: 1, 32>}, {transform_indices = @transform_15, window_bounds = array<i64: 2, 32>}]} {
    %c0_i32 = arith.constant 0 : i32
    %0 = arith.cmpi eq, %arg1, %c0_i32 : i32
    %1 = arith.extui %0 : i1 to i32
    %c0_i32_0 = arith.constant 0 : i32
    %2 = arith.cmpi ne, %1, %c0_i32_0 : i32
    scf.if %2 {
      %c0_59 = arith.constant 0 : index
      %c0_60 = arith.constant 0 : index
      %181 = vector.load %arg2[%c0_59, %c0_60] : memref<16x32xf32, #tpu.memory_space<vmem>>, vector<16x32xf32>
      %c0_61 = arith.constant 0 : index
      %c0_62 = arith.constant 0 : index
      %182 = vector.load %arg18[%c0_61, %c0_62] : memref<16x32xf32, #tpu.memory_space<vmem>>, vector<16x32xf32>
      tpu.vector_store %arg18[%c0_61, %c0_62], %181 {strides = array<i32>} : memref<16x32xf32, #tpu.memory_space<vmem>>, vector<16x32xf32>,
    } else {
    }
    %c0 = arith.constant 0 : index
    %c0_1 = arith.constant 0 : index
    %3 = vector.load %arg18[%c0, %c0_1] : memref<16x32xf32, #tpu.memory_space<vmem>>, vector<16x32xf32>
    %4 = arith.index_cast %arg1 : i32 to index
    %c0_2 = arith.constant 0 : index
    %c0_3 = arith.constant 0 : index
    %5 = vector.load %arg3[%4, %c0_2, %c0_3] : memref<2x32x96xf32, #tpu.memory_space<vmem>>, vector<1x32x96xf32>
    %6 = vector.shape_cast %5 : vector<1x32x96xf32> to vector<32x96xf32>
    %cst = arith.constant dense<0.000000e+00> : vector<16x96xf32>
    %7 = tpu.matmul %3, %6, %cst {dimension_numbers = #tpu.dot_dimension_numbers<[1], [0], [0], [1], [0, 0, 1, 1], [], []>} : vector<16x32xf32>, vector<32x96xf32>, vector<16x96xf32> -> vector<16x96xf32>
    %8 = arith.index_cast %arg1 : i32 to index
    %c0_4 = arith.constant 0 : index
    %c0_5 = arith.constant 0 : index
    %9 = vector.load %arg4[%8, %c0_4, %c0_5] : memref<2x1x96xf32, #tpu.memory_space<vmem>>, vector<1x1x96xf32>
    %10 = vector.shape_cast %9 : vector<1x1x96xf32> to vector<1x96xf32>
    %11 = vector.broadcast %10 : vector<1x96xf32> to vector<16x96xf32>
    %12 = arith.addf %7, %11 : vector<16x96xf32>
    %13 = vector.extract_strided_slice %12 {offsets = [0, 0], sizes = [16, 8], strides = [1, 1]} : vector<16x96xf32> to vector<16x8xf32>
    %14 = vector.shape_cast %13 : vector<16x8xf32> to vector<2x8x8xf32>
    %15 = vector.extract_strided_slice %12 {offsets = [0, 32], sizes = [16, 8], strides = [1, 1]} : vector<16x96xf32> to vector<16x8xf32>
    %16 = vector.shape_cast %15 : vector<16x8xf32> to vector<2x8x8xf32>
    %17 = vector.extract_strided_slice %12 {offsets = [0, 64], sizes = [16, 8], strides = [1, 1]} : vector<16x96xf32> to vector<16x8xf32>
    %18 = vector.shape_cast %17 : vector<16x8xf32> to vector<2x8x8xf32>
    "tpu.trace_start"() <{level = 10 : i32, message = "bqd,bkd->bqk"}> : () -> ()
    %cst_6 = arith.constant dense<0.000000e+00> : vector<2x8x8xf32>
    %19 = tpu.matmul %14, %16, %cst_6 {dimension_numbers = #tpu.dot_dimension_numbers<[2], [2], [1], [1], [0, 0, 0, 1, 1, 1], [0], [0]>} : vector<2x8x8xf32>, vector<2x8x8xf32>, vector<2x8x8xf32> -> vector<2x8x8xf32>
    "tpu.trace_stop"() : () -> ()
    %cst_7 = arith.constant dense<0xFF800000> : vector<2x8xf32>
    %20 = vector.multi_reduction <maximumf>, %19, %cst_7 [2] : vector<2x8x8xf32> to vector<2x8xf32>
    %21 = vector.shape_cast %20 : vector<2x8xf32> to vector<2x8x1xf32>
    %22 = vector.broadcast %21 : vector<2x8x1xf32> to vector<2x8x8xf32>
    %23 = arith.subf %19, %22 : vector<2x8x8xf32>
    %24 = math.exp %23 : vector<2x8x8xf32>
    %cst_8 = arith.constant dense<0.000000e+00> : vector<2x8xf32>
    %25 = vector.multi_reduction <add>, %24, %cst_8 [2] : vector<2x8x8xf32> to vector<2x8xf32>
    %26 = vector.shape_cast %25 : vector<2x8xf32> to vector<2x8x1xf32>
    %27 = tpu.reciprocal %26 {approx = true} : vector<2x8x1xf32> -> vector<2x8x1xf32>
    %28 = vector.broadcast %27 : vector<2x8x1xf32> to vector<2x8x8xf32>
    %29 = arith.mulf %24, %28 : vector<2x8x8xf32>
    "tpu.trace_start"() <{level = 10 : i32, message = "bqk,bkd->bqd"}> : () -> ()
    %cst_9 = arith.constant dense<0.000000e+00> : vector<2x8x8xf32>
    %30 = tpu.matmul %29, %18, %cst_9 {dimension_numbers = #tpu.dot_dimension_numbers<[2], [1], [1], [2], [0, 0, 0, 1, 1, 2], [0], [0]>} : vector<2x8x8xf32>, vector<2x8x8xf32>, vector<2x8x8xf32> -> vector<2x8x8xf32>
    "tpu.trace_stop"() : () -> ()
    %31 = vector.shape_cast %30 : vector<2x8x8xf32> to vector<16x8xf32>
    %32 = vector.extract_strided_slice %12 {offsets = [0, 8], sizes = [16, 8], strides = [1, 1]} : vector<16x96xf32> to vector<16x8xf32>
    %33 = vector.shape_cast %32 : vector<16x8xf32> to vector<2x8x8xf32>
    %34 = vector.extract_strided_slice %12 {offsets = [0, 40], sizes = [16, 8], strides = [1, 1]} : vector<16x96xf32> to vector<16x8xf32>
    %35 = vector.shape_cast %34 : vector<16x8xf32> to vector<2x8x8xf32>
    %36 = vector.extract_strided_slice %12 {offsets = [0, 72], sizes = [16, 8], strides = [1, 1]} : vector<16x96xf32> to vector<16x8xf32>
    %37 = vector.shape_cast %36 : vector<16x8xf32> to vector<2x8x8xf32>
    "tpu.trace_start"() <{level = 10 : i32, message = "bqd,bkd->bqk"}> : () -> ()
    %cst_10 = arith.constant dense<0.000000e+00> : vector<2x8x8xf32>
    %38 = tpu.matmul %33, %35, %cst_10 {dimension_numbers = #tpu.dot_dimension_numbers<[2], [2], [1], [1], [0, 0, 0, 1, 1, 1], [0], [0]>} : vector<2x8x8xf32>, vector<2x8x8xf32>, vector<2x8x8xf32> -> vector<2x8x8xf32>
    "tpu.trace_stop"() : () -> ()
    %cst_11 = arith.constant dense<0xFF800000> : vector<2x8xf32>
    %39 = vector.multi_reduction <maximumf>, %38, %cst_11 [2] : vector<2x8x8xf32> to vector<2x8xf32>
    %40 = vector.shape_cast %39 : vector<2x8xf32> to vector<2x8x1xf32>
    %41 = vector.broadcast %40 : vector<2x8x1xf32> to vector<2x8x8xf32>
    %42 = arith.subf %38, %41 : vector<2x8x8xf32>
    %43 = math.exp %42 : vector<2x8x8xf32>
    %cst_12 = arith.constant dense<0.000000e+00> : vector<2x8xf32>
    %44 = vector.multi_reduction <add>, %43, %cst_12 [2] : vector<2x8x8xf32> to vector<2x8xf32>
    %45 = vector.shape_cast %44 : vector<2x8xf32> to vector<2x8x1xf32>
    %46 = tpu.reciprocal %45 {approx = true} : vector<2x8x1xf32> -> vector<2x8x1xf32>
    %47 = vector.broadcast %46 : vector<2x8x1xf32> to vector<2x8x8xf32>
    %48 = arith.mulf %43, %47 : vector<2x8x8xf32>
    "tpu.trace_start"() <{level = 10 : i32, message = "bqk,bkd->bqd"}> : () -> ()
    %cst_13 = arith.constant dense<0.000000e+00> : vector<2x8x8xf32>
    %49 = tpu.matmul %48, %37, %cst_13 {dimension_numbers = #tpu.dot_dimension_numbers<[2], [1], [1], [2], [0, 0, 0, 1, 1, 2], [0], [0]>} : vector<2x8x8xf32>, vector<2x8x8xf32>, vector<2x8x8xf32> -> vector<2x8x8xf32>
    "tpu.trace_stop"() : () -> ()
    %50 = vector.shape_cast %49 : vector<2x8x8xf32> to vector<16x8xf32>
    %51 = vector.extract_strided_slice %12 {offsets = [0, 16], sizes = [16, 8], strides = [1, 1]} : vector<16x96xf32> to vector<16x8xf32>
    %52 = vector.shape_cast %51 : vector<16x8xf32> to vector<2x8x8xf32>
    %53 = vector.extract_strided_slice %12 {offsets = [0, 48], sizes = [16, 8], strides = [1, 1]} : vector<16x96xf32> to vector<16x8xf32>
    %54 = vector.shape_cast %53 : vector<16x8xf32> to vector<2x8x8xf32>
    %55 = vector.extract_strided_slice %12 {offsets = [0, 80], sizes = [16, 8], strides = [1, 1]} : vector<16x96xf32> to vector<16x8xf32>
    %56 = vector.shape_cast %55 : vector<16x8xf32> to vector<2x8x8xf32>
    "tpu.trace_start"() <{level = 10 : i32, message = "bqd,bkd->bqk"}> : () -> ()
    %cst_14 = arith.constant dense<0.000000e+00> : vector<2x8x8xf32>
    %57 = tpu.matmul %52, %54, %cst_14 {dimension_numbers = #tpu.dot_dimension_numbers<[2], [2], [1], [1], [0, 0, 0, 1, 1, 1], [0], [0]>} : vector<2x8x8xf32>, vector<2x8x8xf32>, vector<2x8x8xf32> -> vector<2x8x8xf32>
    "tpu.trace_stop"() : () -> ()
    %cst_15 = arith.constant dense<0xFF800000> : vector<2x8xf32>
    %58 = vector.multi_reduction <maximumf>, %57, %cst_15 [2] : vector<2x8x8xf32> to vector<2x8xf32>
    %59 = vector.shape_cast %58 : vector<2x8xf32> to vector<2x8x1xf32>
    %60 = vector.broadcast %59 : vector<2x8x1xf32> to vector<2x8x8xf32>
    %61 = arith.subf %57, %60 : vector<2x8x8xf32>
    %62 = math.exp %61 : vector<2x8x8xf32>
    %cst_16 = arith.constant dense<0.000000e+00> : vector<2x8xf32>
    %63 = vector.multi_reduction <add>, %62, %cst_16 [2] : vector<2x8x8xf32> to vector<2x8xf32>
    %64 = vector.shape_cast %63 : vector<2x8xf32> to vector<2x8x1xf32>
    %65 = tpu.reciprocal %64 {approx = true} : vector<2x8x1xf32> -> vector<2x8x1xf32>
    %66 = vector.broadcast %65 : vector<2x8x1xf32> to vector<2x8x8xf32>
    %67 = arith.mulf %62, %66 : vector<2x8x8xf32>
    "tpu.trace_start"() <{level = 10 : i32, message = "bqk,bkd->bqd"}> : () -> ()
    %cst_17 = arith.constant dense<0.000000e+00> : vector<2x8x8xf32>
    %68 = tpu.matmul %67, %56, %cst_17 {dimension_numbers = #tpu.dot_dimension_numbers<[2], [1], [1], [2], [0, 0, 0, 1, 1, 2], [0], [0]>} : vector<2x8x8xf32>, vector<2x8x8xf32>, vector<2x8x8xf32> -> vector<2x8x8xf32>
    "tpu.trace_stop"() : () -> ()
    %69 = vector.shape_cast %68 : vector<2x8x8xf32> to vector<16x8xf32>
    %70 = vector.extract_strided_slice %12 {offsets = [0, 24], sizes = [16, 8], strides = [1, 1]} : vector<16x96xf32> to vector<16x8xf32>
    %71 = vector.shape_cast %70 : vector<16x8xf32> to vector<2x8x8xf32>
    %72 = vector.extract_strided_slice %12 {offsets = [0, 56], sizes = [16, 8], strides = [1, 1]} : vector<16x96xf32> to vector<16x8xf32>
    %73 = vector.shape_cast %72 : vector<16x8xf32> to vector<2x8x8xf32>
    %74 = vector.extract_strided_slice %12 {offsets = [0, 88], sizes = [16, 8], strides = [1, 1]} : vector<16x96xf32> to vector<16x8xf32>
    %75 = vector.shape_cast %74 : vector<16x8xf32> to vector<2x8x8xf32>
    "tpu.trace_start"() <{level = 10 : i32, message = "bqd,bkd->bqk"}> : () -> ()
    %cst_18 = arith.constant dense<0.000000e+00> : vector<2x8x8xf32>
    %76 = tpu.matmul %71, %73, %cst_18 {dimension_numbers = #tpu.dot_dimension_numbers<[2], [2], [1], [1], [0, 0, 0, 1, 1, 1], [0], [0]>} : vector<2x8x8xf32>, vector<2x8x8xf32>, vector<2x8x8xf32> -> vector<2x8x8xf32>
    "tpu.trace_stop"() : () -> ()
    %cst_19 = arith.constant dense<0xFF800000> : vector<2x8xf32>
    %77 = vector.multi_reduction <maximumf>, %76, %cst_19 [2] : vector<2x8x8xf32> to vector<2x8xf32>
    %78 = vector.shape_cast %77 : vector<2x8xf32> to vector<2x8x1xf32>
    %79 = vector.broadcast %78 : vector<2x8x1xf32> to vector<2x8x8xf32>
    %80 = arith.subf %76, %79 : vector<2x8x8xf32>
    %81 = math.exp %80 : vector<2x8x8xf32>
    %cst_20 = arith.constant dense<0.000000e+00> : vector<2x8xf32>
    %82 = vector.multi_reduction <add>, %81, %cst_20 [2] : vector<2x8x8xf32> to vector<2x8xf32>
    %83 = vector.shape_cast %82 : vector<2x8xf32> to vector<2x8x1xf32>
    %84 = tpu.reciprocal %83 {approx = true} : vector<2x8x1xf32> -> vector<2x8x1xf32>
    %85 = vector.broadcast %84 : vector<2x8x1xf32> to vector<2x8x8xf32>
    %86 = arith.mulf %81, %85 : vector<2x8x8xf32>
    "tpu.trace_start"() <{level = 10 : i32, message = "bqk,bkd->bqd"}> : () -> ()
    %cst_21 = arith.constant dense<0.000000e+00> : vector<2x8x8xf32>
    %87 = tpu.matmul %86, %75, %cst_21 {dimension_numbers = #tpu.dot_dimension_numbers<[2], [1], [1], [2], [0, 0, 0, 1, 1, 2], [0], [0]>} : vector<2x8x8xf32>, vector<2x8x8xf32>, vector<2x8x8xf32> -> vector<2x8x8xf32>
    "tpu.trace_stop"() : () -> ()
    %88 = vector.shape_cast %87 : vector<2x8x8xf32> to vector<16x8xf32>
    %89 = tpu.concatenate %31, %50, %69, %88 in 1 : vector<16x8xf32>, vector<16x8xf32>, vector<16x8xf32>, vector<16x8xf32> -> vector<16x32xf32>
    %90 = arith.index_cast %arg1 : i32 to index
    %c0_22 = arith.constant 0 : index
    %c0_23 = arith.constant 0 : index
    %91 = vector.load %arg5[%90, %c0_22, %c0_23] : memref<2x32x32xf32, #tpu.memory_space<vmem>>, vector<1x32x32xf32>
    %92 = vector.shape_cast %91 : vector<1x32x32xf32> to vector<32x32xf32>
    %cst_24 = arith.constant dense<0.000000e+00> : vector<16x32xf32>
    %93 = tpu.matmul %89, %92, %cst_24 {dimension_numbers = #tpu.dot_dimension_numbers<[1], [0], [0], [1], [0, 0, 1, 1], [], []>} : vector<16x32xf32>, vector<32x32xf32>, vector<16x32xf32> -> vector<16x32xf32>
    %94 = arith.index_cast %arg1 : i32 to index
    %c0_25 = arith.constant 0 : index
    %c0_26 = arith.constant 0 : index
    %95 = vector.load %arg6[%94, %c0_25, %c0_26] : memref<2x1x32xf32, #tpu.memory_space<vmem>>, vector<1x1x32xf32>
    %96 = vector.shape_cast %95 : vector<1x1x32xf32> to vector<1x32xf32>
    %97 = vector.broadcast %96 : vector<1x32xf32> to vector<16x32xf32>
    %98 = arith.addf %93, %97 : vector<16x32xf32>
    %99 = arith.addf %3, %98 : vector<16x32xf32>
    %100 = arith.index_cast %arg1 : i32 to index
    %c0_27 = arith.constant 0 : index
    %c0_28 = arith.constant 0 : index
    %101 = vector.load %arg11[%100, %c0_27, %c0_28] : memref<2x1x32xf32, #tpu.memory_space<vmem>>, vector<1x1x32xf32>
    %102 = vector.shape_cast %101 : vector<1x1x32xf32> to vector<1x32xf32>
    %103 = arith.index_cast %arg1 : i32 to index
    %c0_29 = arith.constant 0 : index
    %c0_30 = arith.constant 0 : index
    %104 = vector.load %arg12[%103, %c0_29, %c0_30] : memref<2x1x32xf32, #tpu.memory_space<vmem>>, vector<1x1x32xf32>
    %105 = vector.shape_cast %104 : vector<1x1x32xf32> to vector<1x32xf32>
    %cst_31 = arith.constant dense<0.000000e+00> : vector<16xf32>
    %106 = vector.multi_reduction <add>, %99, %cst_31 [1] : vector<16x32xf32> to vector<16xf32>
    %107 = vector.shape_cast %106 : vector<16xf32> to vector<16x1xf32>
    %cst_32 = arith.constant 3.200000e+01 : f32
    %108 = vector.broadcast %cst_32 : f32 to vector<16x1xf32>
    %109 = arith.divf %107, %108 : vector<16x1xf32>
    %110 = vector.broadcast %109 : vector<16x1xf32> to vector<16x32xf32>
    %111 = arith.subf %99, %110 : vector<16x32xf32>
    %112 = arith.mulf %111, %111 : vector<16x32xf32>
    %cst_33 = arith.constant dense<0.000000e+00> : vector<16xf32>
    %113 = vector.multi_reduction <add>, %112, %cst_33 [1] : vector<16x32xf32> to vector<16xf32>
    %114 = vector.shape_cast %113 : vector<16xf32> to vector<16x1xf32>
    %cst_34 = arith.constant 3.200000e+01 : f32
    %115 = vector.broadcast %cst_34 : f32 to vector<16x1xf32>
    %116 = arith.divf %114, %115 : vector<16x1xf32>
    %117 = vector.broadcast %109 : vector<16x1xf32> to vector<16x32xf32>
    %118 = arith.subf %99, %117 : vector<16x32xf32>
    %cst_35 = arith.constant 9.99999974E-6 : f32
    %119 = vector.broadcast %cst_35 : f32 to vector<16x1xf32>
    %120 = arith.addf %116, %119 : vector<16x1xf32>
    %121 = math.rsqrt %120 : vector<16x1xf32>
    %122 = vector.broadcast %121 : vector<16x1xf32> to vector<16x32xf32>
    %123 = arith.mulf %118, %122 : vector<16x32xf32>
    %124 = vector.broadcast %102 : vector<1x32xf32> to vector<16x32xf32>
    %125 = arith.mulf %123, %124 : vector<16x32xf32>
    %126 = vector.broadcast %105 : vector<1x32xf32> to vector<16x32xf32>
    %127 = arith.addf %125, %126 : vector<16x32xf32>
    %128 = arith.index_cast %arg1 : i32 to index
    %c0_36 = arith.constant 0 : index
    %c0_37 = arith.constant 0 : index
    %129 = vector.load %arg7[%128, %c0_36, %c0_37] : memref<2x32x128xf32, #tpu.memory_space<vmem>>, vector<1x32x128xf32>
    %130 = vector.shape_cast %129 : vector<1x32x128xf32> to vector<32x128xf32>
    %cst_38 = arith.constant dense<0.000000e+00> : vector<16x128xf32>
    %131 = tpu.matmul %127, %130, %cst_38 {dimension_numbers = #tpu.dot_dimension_numbers<[1], [0], [0], [1], [0, 0, 1, 1], [], []>} : vector<16x32xf32>, vector<32x128xf32>, vector<16x128xf32> -> vector<16x128xf32>
    %132 = arith.index_cast %arg1 : i32 to index
    %c0_39 = arith.constant 0 : index
    %c0_40 = arith.constant 0 : index
    %133 = vector.load %arg8[%132, %c0_39, %c0_40] : memref<2x1x128xf32, #tpu.memory_space<vmem>>, vector<1x1x128xf32>
    %134 = vector.shape_cast %133 : vector<1x1x128xf32> to vector<1x128xf32>
    %135 = vector.broadcast %134 : vector<1x128xf32> to vector<16x128xf32>
    %136 = arith.addf %131, %135 : vector<16x128xf32>
    %cst_41 = arith.constant 0.000000e+00 : f32
    %137 = vector.broadcast %cst_41 : f32 to vector<16x128xf32>
    %138 = arith.maximumf %136, %137 : vector<16x128xf32>
    %139 = arith.index_cast %arg1 : i32 to index
    %c0_42 = arith.constant 0 : index
    %c0_43 = arith.constant 0 : index
    %140 = vector.load %arg9[%139, %c0_42, %c0_43] : memref<2x128x32xf32, #tpu.memory_space<vmem>>, vector<1x128x32xf32>
    %141 = vector.shape_cast %140 : vector<1x128x32xf32> to vector<128x32xf32>
    %cst_44 = arith.constant dense<0.000000e+00> : vector<16x32xf32>
    %142 = tpu.matmul %138, %141, %cst_44 {dimension_numbers = #tpu.dot_dimension_numbers<[1], [0], [0], [1], [0, 0, 1, 1], [], []>} : vector<16x128xf32>, vector<128x32xf32>, vector<16x32xf32> -> vector<16x32xf32>
    %143 = arith.index_cast %arg1 : i32 to index
    %c0_45 = arith.constant 0 : index
    %c0_46 = arith.constant 0 : index
    %144 = vector.load %arg10[%143, %c0_45, %c0_46] : memref<2x1x32xf32, #tpu.memory_space<vmem>>, vector<1x1x32xf32>
    %145 = vector.shape_cast %144 : vector<1x1x32xf32> to vector<1x32xf32>
    %146 = vector.broadcast %145 : vector<1x32xf32> to vector<16x32xf32>
    %147 = arith.addf %142, %146 : vector<16x32xf32>
    %148 = arith.addf %127, %147 : vector<16x32xf32>
    %149 = arith.index_cast %arg1 : i32 to index
    %c0_47 = arith.constant 0 : index
    %c0_48 = arith.constant 0 : index
    %150 = vector.load %arg13[%149, %c0_47, %c0_48] : memref<2x1x32xf32, #tpu.memory_space<vmem>>, vector<1x1x32xf32>
    %151 = vector.shape_cast %150 : vector<1x1x32xf32> to vector<1x32xf32>
    %152 = arith.index_cast %arg1 : i32 to index
    %c0_49 = arith.constant 0 : index
    %c0_50 = arith.constant 0 : index
    %153 = vector.load %arg14[%152, %c0_49, %c0_50] : memref<2x1x32xf32, #tpu.memory_space<vmem>>, vector<1x1x32xf32>
    %154 = vector.shape_cast %153 : vector<1x1x32xf32> to vector<1x32xf32>
    %cst_51 = arith.constant dense<0.000000e+00> : vector<16xf32>
    %155 = vector.multi_reduction <add>, %148, %cst_51 [1] : vector<16x32xf32> to vector<16xf32>
    %156 = vector.shape_cast %155 : vector<16xf32> to vector<16x1xf32>
    %cst_52 = arith.constant 3.200000e+01 : f32
    %157 = vector.broadcast %cst_52 : f32 to vector<16x1xf32>
    %158 = arith.divf %156, %157 : vector<16x1xf32>
    %159 = vector.broadcast %158 : vector<16x1xf32> to vector<16x32xf32>
    %160 = arith.subf %148, %159 : vector<16x32xf32>
    %161 = arith.mulf %160, %160 : vector<16x32xf32>
    %cst_53 = arith.constant dense<0.000000e+00> : vector<16xf32>
    %162 = vector.multi_reduction <add>, %161, %cst_53 [1] : vector<16x32xf32> to vector<16xf32>
    %163 = vector.shape_cast %162 : vector<16xf32> to vector<16x1xf32>
    %cst_54 = arith.constant 3.200000e+01 : f32
    %164 = vector.broadcast %cst_54 : f32 to vector<16x1xf32>
    %165 = arith.divf %163, %164 : vector<16x1xf32>
    %166 = vector.broadcast %158 : vector<16x1xf32> to vector<16x32xf32>
    %167 = arith.subf %148, %166 : vector<16x32xf32>
    %cst_55 = arith.constant 9.99999974E-6 : f32
    %168 = vector.broadcast %cst_55 : f32 to vector<16x1xf32>
    %169 = arith.addf %165, %168 : vector<16x1xf32>
    %170 = math.rsqrt %169 : vector<16x1xf32>
    %171 = vector.broadcast %170 : vector<16x1xf32> to vector<16x32xf32>
    %172 = arith.mulf %167, %171 : vector<16x32xf32>
    %173 = vector.broadcast %151 : vector<1x32xf32> to vector<16x32xf32>
    %174 = arith.mulf %172, %173 : vector<16x32xf32>
    %175 = vector.broadcast %154 : vector<1x32xf32> to vector<16x32xf32>
    %176 = arith.addf %174, %175 : vector<16x32xf32>
    %c0_56 = arith.constant 0 : index
    %c0_57 = arith.constant 0 : index
    %177 = vector.load %arg18[%c0_56, %c0_57] : memref<16x32xf32, #tpu.memory_space<vmem>>, vector<16x32xf32>
    tpu.vector_store %arg18[%c0_56, %c0_57], %176 {strides = array<i32>} : memref<16x32xf32, #tpu.memory_space<vmem>>, vector<16x32xf32>,
    %c1_i32 = arith.constant 1 : i32
    %178 = arith.cmpi eq, %arg1, %c1_i32 : i32
    %179 = arith.extui %178 : i1 to i32
    %c0_i32_58 = arith.constant 0 : i32
    %180 = arith.cmpi ne, %179, %c0_i32_58 : i32
    scf.if %180 {
      %c7 = arith.constant 7 : index
      %c0_59 = arith.constant 0 : index
      %181 = tpu.strided_load %arg18[%c7, %c0_59] {strides = array<i32: 8, 1>} : memref<16x32xf32, #tpu.memory_space<vmem>>, vector<2x32xf32>
      %c0_60 = arith.constant 0 : index
      %c0_61 = arith.constant 0 : index
      %182 = vector.load %arg15[%c0_60, %c0_61] : memref<32x32xf32, #tpu.memory_space<vmem>>, vector<32x32xf32>
      %cst_62 = arith.constant dense<0.000000e+00> : vector<2x32xf32>
      %183 = tpu.matmul %181, %182, %cst_62 {dimension_numbers = #tpu.dot_dimension_numbers<[1], [0], [0], [1], [0, 0, 1, 1], [], []>} : vector<2x32xf32>, vector<32x32xf32>, vector<2x32xf32> -> vector<2x32xf32>
      %c0_63 = arith.constant 0 : index
      %c0_64 = arith.constant 0 : index
      %184 = vector.load %arg16[%c0_63, %c0_64] : memref<1x32xf32, #tpu.memory_space<vmem>>, vector<1x32xf32>
      %185 = vector.broadcast %184 : vector<1x32xf32> to vector<2x32xf32>
      %186 = arith.addf %183, %185 : vector<2x32xf32>
      %c0_65 = arith.constant 0 : index
      %c0_66 = arith.constant 0 : index
      %187 = vector.load %arg17[%c0_65, %c0_66] : memref<2x32xf32, #tpu.memory_space<vmem>>, vector<2x32xf32>
      tpu.vector_store %arg17[%c0_65, %c0_66], %186 {strides = array<i32>} : memref<2x32xf32, #tpu.memory_space<vmem>>, vector<2x32xf32>,
    } else {
    }
    return
  }
  func.func @transform_0(%arg0: i32, %arg1: i32) -> (i32, i32) {
    %c0_i32 = arith.constant 0 : i32
    %c0_i32_0 = arith.constant 0 : i32
    return %arg0, %c0_i32 : i32, i32
  }
  func.func @transform_1(%arg0: i32, %arg1: i32) -> (i32, i32, i32) {
    %c0_i32 = arith.constant 0 : i32
    %c0_i32_0 = arith.constant 0 : i32
    %c0_i32_1 = arith.constant 0 : i32
    %c0_i32_2 = arith.constant 0 : i32
    return %c0_i32, %c0_i32_0, %c0_i32_1 : i32, i32, i32
  }
  func.func @transform_2(%arg0: i32, %arg1: i32) -> (i32, i32, i32) {
    %c0_i32 = arith.constant 0 : i32
    %c0_i32_0 = arith.constant 0 : i32
    %c0_i32_1 = arith.constant 0 : i32
    %c0_i32_2 = arith.constant 0 : i32
    return %c0_i32, %c0_i32_0, %c0_i32_1 : i32, i32, i32
  }
  func.func @transform_3(%arg0: i32, %arg1: i32) -> (i32, i32, i32) {
    %c0_i32 = arith.constant 0 : i32
    %c0_i32_0 = arith.constant 0 : i32
    %c0_i32_1 = arith.constant 0 : i32
    %c0_i32_2 = arith.constant 0 : i32
    return %c0_i32, %c0_i32_0, %c0_i32_1 : i32, i32, i32
  }
  func.func @transform_4(%arg0: i32, %arg1: i32) -> (i32, i32, i32) {
    %c0_i32 = arith.constant 0 : i32
    %c0_i32_0 = arith.constant 0 : i32
    %c0_i32_1 = arith.constant 0 : i32
    %c0_i32_2 = arith.constant 0 : i32
    return %c0_i32, %c0_i32_0, %c0_i32_1 : i32, i32, i32
  }
  func.func @transform_5(%arg0: i32, %arg1: i32) -> (i32, i32, i32) {
    %c0_i32 = arith.constant 0 : i32
    %c0_i32_0 = arith.constant 0 : i32
    %c0_i32_1 = arith.constant 0 : i32
    %c0_i32_2 = arith.constant 0 : i32
    return %c0_i32, %c0_i32_0, %c0_i32_1 : i32, i32, i32
  }
  func.func @transform_6(%arg0: i32, %arg1: i32) -> (i32, i32, i32) {
    %c0_i32 = arith.constant 0 : i32
    %c0_i32_0 = arith.constant 0 : i32
    %c0_i32_1 = arith.constant 0 : i32
    %c0_i32_2 = arith.constant 0 : i32
    return %c0_i32, %c0_i32_0, %c0_i32_1 : i32, i32, i32
  }
  func.func @transform_7(%arg0: i32, %arg1: i32) -> (i32, i32, i32) {
    %c0_i32 = arith.constant 0 : i32
    %c0_i32_0 = arith.constant 0 : i32
    %c0_i32_1 = arith.constant 0 : i32
    %c0_i32_2 = arith.constant 0 : i32
    return %c0_i32, %c0_i32_0, %c0_i32_1 : i32, i32, i32
  }
  func.func @transform_8(%arg0: i32, %arg1: i32) -> (i32, i32, i32) {
    %c0_i32 = arith.constant 0 : i32
    %c0_i32_0 = arith.constant 0 : i32
    %c0_i32_1 = arith.constant 0 : i32
    %c0_i32_2 = arith.constant 0 : i32
    return %c0_i32, %c0_i32_0, %c0_i32_1 : i32, i32, i32
  }
  func.func @transform_9(%arg0: i32, %arg1: i32) -> (i32, i32, i32) {
    %c0_i32 = arith.constant 0 : i32
    %c0_i32_0 = arith.constant 0 : i32
    %c0_i32_1 = arith.constant 0 : i32
    %c0_i32_2 = arith.constant 0 : i32
    return %c0_i32, %c0_i32_0, %c0_i32_1 : i32, i32, i32
  }
  func.func @transform_10(%arg0: i32, %arg1: i32) -> (i32, i32, i32) {
    %c0_i32 = arith.constant 0 : i32
    %c0_i32_0 = arith.constant 0 : i32
    %c0_i32_1 = arith.constant 0 : i32
    %c0_i32_2 = arith.constant 0 : i32
    return %c0_i32, %c0_i32_0, %c0_i32_1 : i32, i32, i32
  }
  func.func @transform_11(%arg0: i32, %arg1: i32) -> (i32, i32, i32) {
    %c0_i32 = arith.constant 0 : i32
    %c0_i32_0 = arith.constant 0 : i32
    %c0_i32_1 = arith.constant 0 : i32
    %c0_i32_2 = arith.constant 0 : i32
    return %c0_i32, %c0_i32_0, %c0_i32_1 : i32, i32, i32
  }
  func.func @transform_12(%arg0: i32, %arg1: i32) -> (i32, i32, i32) {
    %c0_i32 = arith.constant 0 : i32
    %c0_i32_0 = arith.constant 0 : i32
    %c0_i32_1 = arith.constant 0 : i32
    %c0_i32_2 = arith.constant 0 : i32
    return %c0_i32, %c0_i32_0, %c0_i32_1 : i32, i32, i32
  }
  func.func @transform_13(%arg0: i32, %arg1: i32) -> (i32, i32) {
    %c0_i32 = arith.constant 0 : i32
    %c0_i32_0 = arith.constant 0 : i32
    %c0_i32_1 = arith.constant 0 : i32
    return %c0_i32, %c0_i32_0 : i32, i32
  }
  func.func @transform_14(%arg0: i32, %arg1: i32) -> (i32, i32) {
    %c0_i32 = arith.constant 0 : i32
    %c0_i32_0 = arith.constant 0 : i32
    %c0_i32_1 = arith.constant 0 : i32
    return %c0_i32, %c0_i32_0 : i32, i32
  }
  func.func @transform_15(%arg0: i32, %arg1: i32) -> (i32, i32) {
    %c0_i32 = arith.constant 0 : i32
    %c0_i32_0 = arith.constant 0 : i32
    return %arg0, %c0_i32 : i32, i32
  }
}

</mosaic_0001>

<bundles_post_ra>
// kernel: history_transformer_forward.1
= control target key start
LH: loop header
LB: loop body
LE: loop exit
PB: predicated region body
PF: predicated region fallthrough
CT: control target
= control target key end

     0   :  { %20 = vsyncpa [#allocation4], 0  ;;  %s3042_s18 = smov 0   ;;  %s3044_s19 = smov 0   ;;  %s3346_s0 = inlined_call_operand.vmem [shape: f32[16,32], index: 0, kind: input, shape index: {}]   ;;  %s3347_s1 = inlined_call_operand.vmem [shape: f32[2,32,96], index: 1, kind: input, shape index: {}]   ;;  %s3348_s2 = inlined_call_operand.vmem [shape: f32[2,1,96], index: 2, kind: input, shape index: {}]   ;;  %s3349_s3 = inlined_call_operand.vmem [shape: f32[2,32,32], index: 3, kind: input, shape index: {}]   ;;  %s3350_s4 = inlined_call_operand.vmem [shape: f32[2,1,32], index: 4, kind: input, shape index: {}]   ;;  %s3351_s5 = inlined_call_operand.vmem [shape: f32[2,32,128], index: 5, kind: input, shape index: {}]   ;;  %s3352_s6 = inlined_call_operand.vmem [shape: f32[2,1,128], index: 6, kind: input, shape index: {}]   ;;  %s3353_s7 = inlined_call_operand.vmem [shape: f32[2,128,32], index: 7, kind: input, shape index: {}]   ;;  %s3354_s8 = inlined_call_operand.vmem [shape: f32[2,1,32], index: 8, kind: input, shape index: {}]   ;;  %s3355_s9 = inlined_call_operand.vmem [shape: f32[2,1,32], index: 9, kind: input, shape index: {}]   ;;  %s3356_s10 = inlined_call_operand.vmem [shape: f32[2,1,32], index: 10, kind: input, shape index: {}]   ;;  %s3357_s11 = inlined_call_operand.vmem [shape: f32[2,1,32], index: 11, kind: input, shape index: {}]   ;;  %s3358_s12 = inlined_call_operand.vmem [shape: f32[2,1,32], index: 12, kind: input, shape index: {}]   ;;  %s3359_s13 = inlined_call_operand.vmem [shape: f32[32,32], index: 13, kind: input, shape index: {}]   ;;  %s3360_s14 = inlined_call_operand.vmem [shape: f32[1,32], index: 14, kind: input, shape index: {}]   ;;  %s3361_s15 = inlined_call_operand.hbm [shape: f32[2,32], index: 15, kind: output, shape index: {}]  }
   0x1   :  { %s3046_s20 = smov 0  }
   0x2 LB: > { %s2518_s21 = sadd.s32 4294967295, %s2941_s20   ;;  %s35_s22 = sadd.s32 1, %s2937_s19  ;;  %s2941_s20 = sphi %s3046_s20, %s26_s20   ;;  %s2937_s19 = sphi %s3044_s19, %s3364_s19   ;;  %s2933_s18 = sphi %s3042_s18, %s3363_s18  }
   0x3   : > { %p36_p0 = scmp.ge.s32.totalorder %s35_s22, 2  ;;  %p2521_p1 = scmp.ge.s32.totalorder %s2941_s20, 1 }
   0x4   : > { %p451_p2 = scmp.lt.s32.totalorder %s2941_s20, 3 }
   0x5   : > { %s3366_s22 = smov (%p36_p0, %s35_s22), 0 }
   0x6   : > { %p452_p3 = pnand %p2521_p1, %p451_p2 }
   0x7   : > { %p2522_p4 = scmp.ne.s32.totalorder (!%p452_p3), %s2933_s18, 0 }
   0x8   : > { %455 = sbr.rel (%p452_p3) target bundleno = 4130 (0x1022), region = 80 }
   0xd   : > { %503 = sbr.rel (%p2522_p4) target bundleno = 20 (0x14), region = 84 }
  0x12   : > { %v504_v0 = vld [vmem:[%s3346_s0] sm:$0xff]  ;;  %vm506_vm0 = vcmask 261120   ;;  %v505_v1 = vld [vmem:[%s3346_s0 + $0x8] sm:$0xff] }
  0x13   : > { %507 = vst.msk [vmem:[#allocation2] sm:$0xff] %vm506_vm0, %v504_v0  ;;  %508 = vst.msk [vmem:[#allocation2 + $0x8] sm:$0xff] %vm506_vm0, %v505_v1 }
  0x14 PF: > { %s3071_s27 = sshll.u32 %s2933_s18, 5  ;;  %vm525_vm1 = vcmask 261120   ;;  %v2943_v8 = vmov 0.0   ;;  %vm2944_vm2 = vmmov 0   ;;  %s517_s23 = scalar_lea.vmem %s3348_s2, %s2933_s18  ;;  %vm610_vm3 = vcmask 64512  }
  0x15   : > { %s512_s30 = scalar_lea.vmem %s3347_s1, %s3071_s27  ;;  %2664 = vmatprep.subr.mxu0 %v2943_v8  ;;  %2666 = vmatprep.mubr.msk.f32.mxu0 %vm2944_vm2, %v2943_v8  ;;  %v2524_v10 = vld [vmem:[%s517_s23] ss:$0 sm:$0xff]  ;;  %s2945_s24 = smov 96   ;;  %vm1955_vm4 = vcmask 195584   ;;  %vm1952_vm5 = vcmask 130048  }
  0x16   : > { %v516_v3 = vld [vmem:[%s512_s30 + $0x18] sm:$0xff]  ;;  %v515_v4 = vld [vmem:[%s512_s30 + $0x10] sm:$0xff]  ;;  %v514_v5 = vld [vmem:[%s512_s30 + $0x8] sm:$0xff]  ;;  %s2946_s25 = smov 64   ;;  %s2947_s26 = smov 88  }
  0x17   : > { %2643 = vmatprep.subr.mxu1 %v516_v3  ;;  %v513_v6 = vld [vmem:[%s512_s30] sm:$0xff]  ;;  %s2948_s28 = smov 120   ;;  %s2949_s29 = smov 56  }
  0x18   : > { %2644 = vmatpush3.msra.mxu1 %v516_v3  ;;  %s2950_s30 = smov 80   ;;  %s2951_s16 = smov 112  }
  0x19   : > { %2645 = vmatprep.subr.mxu1 %v515_v4  ;;  %s2952_s17 = smov 48   ;;  %s2953_s23 = smov 72  }
  0x1a   : > { %v3073_v2 = vld [vmem:[#allocation2] sm:$0xff]  ;;  %2646 = vmatpush3.msra.mxu1 %v515_v4  ;;  %v3081_v7 = vld [vmem:[#allocation2 + $0x8] sm:$0xff]  ;;  %p2563_p5 = scmp.ne.s32.totalorder %s2933_s18, 1 }
  0x1b   : > { %2651 = vmatprep.mubr.msk.f32.mxu1 %vm525_vm1, %v3073_v2  ;;  %2647 = vmatprep.subr.mxu1 %v514_v5 }
  0x1c   : > { %2648 = vmatpush3.msra.mxu1 %v514_v5 }
  0x1d   : > { %2649 = vmatprep.subr.mxu1 %v513_v6 }
  0x1e   : > { %2650 = vmatpush3.msra.mxu1 %v513_v6 }
  0x1f   : > { %2652 = vmatmul.mubr.msk.f32.vlgmr.msra.gmra.mxu1 %vm525_vm1, %v3081_v7  ;;  %2654 = vmatprep.subr.mxu1 %v2943_v8 }
  0x20   : > { %2656 = vmatprep.mubr.msk.f32.mxu1 %vm2944_vm2, %v2943_v8 }
  0xdf   : > { %v2653_v9 = vpop.f32.mrf.mxu1 }
  0xe0   : > { %v3098_v13 = vadd.f32 %v2653_v9, %v2524_v10 }
  0xe1   : > { %v598_v11 = vpop.f32.mrf.mxu1 }
  0xe2   : > { %v3095_v12 = vadd.f32 %v2524_v10, %v598_v11 }
  0xe4   : > { %608 = vrot.lane.b32.xlu0 %v3095_v12, %s2945_s24 }
  0xe8   : > { %686 = vrot.lane.b32.xlu0 %v3098_v13, %s2945_s24  ;;  %s2954_s24 = smov 104  }
 0x156   : > { %v609_v14 = vpop.permute.xlu0 %608 }
 0x157   : > { %2655 = vmatpush3.xpose.msk.msra.mxu1 %vm610_vm3, %v609_v14 }
 0x158   : > { %2659 = vmatprep.subr.mxu1 %v2943_v8 }
 0x15a   : > { %2657 = vmatmul.mubr.msk.f32.vlgmr.msra.gmra.mxu1 %vm610_vm3, %v3095_v12  ;;  %v687_v15 = vpop.permute.xlu0 %686 }
 0x15b   : > { %2660 = vmatpush3.xpose.msk.msra.mxu1 %vm610_vm3, %v687_v15  ;;  %2661 = vmatprep.mubr.msk.f32.mxu1 %vm2944_vm2, %v2943_v8 }
 0x15c   : > { %2669 = vmatprep.subr.mxu1 %v2943_v8 }
 0x15e   : > { %2662 = vmatmul.mubr.msk.f32.vlgmr.msra.gmra.mxu1 %vm610_vm3, %v3098_v13 }
 0x15f   : > { %2671 = vmatprep.mubr.msk.f32.mxu1 %vm2944_vm2, %v2943_v8 }
 0x21a   : > { %v681_v16 = vpop.f32.mrf.mxu1 }
 0x21b   : > { %v762_v17 = vsel %vm610_vm3, %v681_v16, -inf }
 0x21c   : > { %763 = vmax.xlane.f32.xlu1 %v762_v17  ;;  %v2658_v18 = vpop.f32.mrf.mxu1 }
 0x21e   : > { %v758_v19 = vpop.f32.mrf.mxu1 }
 0x21f   : > { %v765_v20 = vsel %vm610_vm3, %v758_v19, -inf }
 0x220   : > { %766 = vmax.xlane.f32.xlu1 %v765_v20  ;;  %v2663_v21 = vpop.f32.mrf.mxu1 }
 0x231   : > { %784 = vrot.lane.b32.xlu1 %v3095_v12, %s2946_s25 }
 0x235   : > { %860 = vrot.lane.b32.xlu1 %v3098_v13, %s2946_s25  ;;  %s2955_s25 = smov 40  }
 0x239   : > { %938 = vrot.lane.b32.xlu1 %v3095_v12, %s2947_s26 }
 0x23d   : > { %1016 = vrot.lane.b32.xlu1 %v3098_v13, %s2947_s26  ;;  %s2956_s26 = smov 8  }
 0x2a5   : > { %v764_v22 = vpop.xlane.xlu1 %763 }
 0x2a6   : > { %v768_v23 = vsub.f32 %v681_v16, %v764_v22 }
 0x2a8   : > { %v770_v24 = vmul.f32 1.442695, %v768_v23 }
 0x2a9   : > { %v767_v25 = vpop.xlane.xlu1 %766 }
 0x2aa   : > { %2851 = vpow2.f32 %v770_v24  ;;  %v769_v26 = vsub.f32 %v758_v19, %v767_v25 }
 0x2ac   : > { %v772_v27 = vmul.f32 1.442695, %v769_v26 }
 0x2ad   : > { %v785_v28 = vpop.permute.xlu1 %784 }
 0x2ae   : > { %2853 = vpow2.f32 %v772_v27  ;;  %2665 = vmatpush3.msra.mxu0 %v785_v28 }
 0x2af   : > { %2674 = vmatprep.subr.mxu0 %v2943_v8 }
 0x2b1   : > { %v861_v29 = vpop.permute.xlu1 %860 }
 0x2b2   : > { %2670 = vmatpush3.msra.mxu1 %v861_v29 }
 0x2b3   : > { %2679 = vmatprep.subr.mxu1 %v2943_v8 }
 0x2b5   : > { %v939_v34 = vpop.permute.xlu1 %938 }
 0x2b7   : > { %v2852_v30 = vpop.eup %2851 }
 0x2b8   : > { %v774_v31 = vsel %vm610_vm3, %v2852_v30, 0.0 }
 0x2b9   : > { %775 = vadd.xlane.f32.xlu0 %v774_v31  ;;  %v1017_v35 = vpop.permute.xlu1 %1016 }
 0x2bb   : > { %v2854_v32 = vpop.eup %2853 }
 0x2bc   : > { %v777_v33 = vsel %vm610_vm3, %v2854_v32, 0.0 }
 0x2bd   : > { %778 = vadd.xlane.f32.xlu1 %v777_v33 }
 0x2ce   : > { %1014 = vrot.lane.b32.xlu1 %v3098_v13, %s2948_s28 }
 0x2cf   : > { %936 = vrot.lane.b32.xlu0 %v3095_v12, %s2948_s28  ;;  %s2957_s28 = smov 16  }
 0x342   : > { %v776_v36 = vpop.xlane.xlu0 %775 }
 0x343   : > { %2855 = vrcp.f32 %v776_v36 }
 0x346   : > { %v779_v37 = vpop.xlane.xlu1 %778  ;;  %v937_v42 = vpop.permute.xlu0 %936 }
 0x347   : > { %2857 = vrcp.f32 %v779_v37 }
 0x34a   : > { %v1015_v43 = vpop.permute.xlu1 %1014 }
 0x350   : > { %v2856_v38 = vpop.eup %2855 }
 0x351   : > { %v782_v39 = vmul.f32 %v2856_v38, %v2852_v30 }
 0x353   : > { %2667 = vmatmul.mubr.msk.f32.vlgmr.msra.gmra.mxu0 %vm610_vm3, %v782_v39 }
 0x354   : > { %v2858_v40 = vpop.eup %2857  ;;  %2675 = vmatpush3.xpose.msk.msra.mxu0 %vm610_vm3, %v939_v34  ;;  %2676 = vmatprep.mubr.msk.f32.mxu0 %vm2944_vm2, %v2943_v8 }
 0x355   : > { %v783_v41 = vmul.f32 %v2858_v40, %v2854_v32  ;;  %2684 = vmatprep.subr.mxu0 %v2943_v8 }
 0x357   : > { %2672 = vmatmul.mubr.msk.f32.vlgmr.msra.gmra.mxu1 %vm610_vm3, %v783_v41  ;;  %2677 = vmatmul.mubr.msk.f32.vlgmr.msra.gmra.mxu0 %vm610_vm3, %v937_v42 }
 0x358   : > { %2680 = vmatpush3.xpose.msk.msra.mxu1 %vm610_vm3, %v1017_v35  ;;  %2681 = vmatprep.mubr.msk.f32.mxu1 %vm2944_vm2, %v2943_v8 }
 0x359   : > { %2689 = vmatprep.subr.mxu1 %v2943_v8  ;;  %2686 = vmatprep.mubr.msk.f32.mxu0 %vm2944_vm2, %v2943_v8 }
 0x35b   : > { %2682 = vmatmul.mubr.msk.f32.vlgmr.msra.gmra.mxu1 %vm610_vm3, %v1015_v43 }
 0x35c   : > { %2691 = vmatprep.mubr.msk.f32.mxu1 %vm2944_vm2, %v2943_v8 }
 0x413   : > { %v3141_v44 = vpop.f32.mrf.mxu0 }
 0x415   : > { %v2668_v45 = vpop.f32.mrf.mxu0 }
 0x417   : > { %v3143_v46 = vpop.f32.mrf.mxu1  ;;  %v1010_v47 = vpop.f32.mrf.mxu0 }
 0x418   : > { %v1092_v48 = vsel %vm610_vm3, %v1010_v47, -inf }
 0x419   : > { %v2673_v49 = vpop.f32.mrf.mxu1  ;;  %1093 = vmax.xlane.f32.xlu1 %v1092_v48  ;;  %v2678_v50 = vpop.f32.mrf.mxu0 }
 0x41b   : > { %v1088_v51 = vpop.f32.mrf.mxu1 }
 0x41c   : > { %v1095_v52 = vsel %vm610_vm3, %v1088_v51, -inf }
 0x41d   : > { %1096 = vmax.xlane.f32.xlu0 %v1095_v52  ;;  %v2683_v53 = vpop.f32.mrf.mxu1 }
 0x42a   : > { %1114 = vrot.lane.b32.xlu1 %v3095_v12, %s2949_s29 }
 0x42e   : > { %1268 = vrot.lane.b32.xlu1 %v3095_v12, %s2950_s30 }
 0x432   : > { %1346 = vrot.lane.b32.xlu1 %v3098_v13, %s2950_s30  ;;  %s2559_s30 = sshll.u32 %s2933_s18, 7 }
 0x433   : > { %1190 = vrot.lane.b32.xlu0 %v3098_v13, %s2949_s29  ;;  %s2101_s29 = scalar_lea.vmem %s3351_s5, %s3071_s27 }
 0x437   : > { %1266 = vrot.lane.b32.xlu0 %v3095_v12, %s2951_s16 }
 0x4a2   : > { %v1094_v54 = vpop.xlane.xlu1 %1093 }
 0x4a3   : > { %v1098_v55 = vsub.f32 %v1010_v47, %v1094_v54 }
 0x4a5   : > { %v1100_v56 = vmul.f32 1.442695, %v1098_v55 }
 0x4a6   : > { %v1115_v57 = vpop.permute.xlu1 %1114  ;;  %v1097_v58 = vpop.xlane.xlu0 %1096 }
 0x4a7   : > { %2859 = vpow2.f32 %v1100_v56  ;;  %v1099_v59 = vsub.f32 %v1088_v51, %v1097_v58  ;;  %2685 = vmatpush3.msra.mxu0 %v1115_v57 }
 0x4a8   : > { %2694 = vmatprep.subr.mxu0 %v2943_v8 }
 0x4a9   : > { %v1102_v60 = vmul.f32 1.442695, %v1099_v59 }
 0x4aa   : > { %v1191_v61 = vpop.permute.xlu0 %1190  ;;  %v1269_v3 = vpop.permute.xlu1 %1268 }
 0x4ab   : > { %2861 = vpow2.f32 %v1102_v60  ;;  %2690 = vmatpush3.msra.mxu1 %v1191_v61 }
 0x4ac   : > { %2699 = vmatprep.subr.mxu1 %v2943_v8 }
 0x4ae   : > { %v1347_v4 = vpop.permute.xlu1 %1346  ;;  %v1267_v15 = vpop.permute.xlu0 %1266 }
 0x4b4   : > { %v2860_v62 = vpop.eup %2859 }
 0x4b5   : > { %v1104_v63 = vsel %vm610_vm3, %v2860_v62, 0.0 }
 0x4b6   : > { %1105 = vadd.xlane.f32.xlu1 %v1104_v63 }
 0x4b8   : > { %v2862_v0 = vpop.eup %2861 }
 0x4b9   : > { %v1107_v1 = vsel %vm610_vm3, %v2862_v0, 0.0 }
 0x4ba   : > { %1108 = vadd.xlane.f32.xlu1 %v1107_v1 }
 0x4cb   : > { %1344 = vrot.lane.b32.xlu1 %v3098_v13, %s2951_s16  ;;  %s1958_s16 = scalar_lea.vmem %s3349_s3, %s3071_s27 }
 0x53f   : > { %v1106_v5 = vpop.xlane.xlu1 %1105 }
 0x540   : > { %2863 = vrcp.f32 %v1106_v5 }
 0x543   : > { %v1109_v6 = vpop.xlane.xlu1 %1108 }
 0x544   : > { %2865 = vrcp.f32 %v1109_v6 }
 0x547   : > { %v1345_v16 = vpop.permute.xlu1 %1344 }
 0x54d   : > { %v2864_v9 = vpop.eup %2863 }
 0x54e   : > { %v1112_v10 = vmul.f32 %v2864_v9, %v2860_v62 }
 0x550   : > { %2687 = vmatmul.mubr.msk.f32.vlgmr.msra.gmra.mxu0 %vm610_vm3, %v1112_v10 }
 0x551   : > { %v2866_v11 = vpop.eup %2865  ;;  %2695 = vmatpush3.xpose.msk.msra.mxu0 %vm610_vm3, %v1269_v3  ;;  %2696 = vmatprep.mubr.msk.f32.mxu0 %vm2944_vm2, %v2943_v8 }
 0x552   : > { %v1113_v14 = vmul.f32 %v2866_v11, %v2862_v0  ;;  %2704 = vmatprep.subr.mxu0 %v2943_v8 }
 0x554   : > { %2692 = vmatmul.mubr.msk.f32.vlgmr.msra.gmra.mxu1 %vm610_vm3, %v1113_v14  ;;  %2697 = vmatmul.mubr.msk.f32.vlgmr.msra.gmra.mxu0 %vm610_vm3, %v1267_v15 }
 0x555   : > { %2700 = vmatpush3.xpose.msk.msra.mxu1 %vm610_vm3, %v1347_v4  ;;  %2701 = vmatprep.mubr.msk.f32.mxu1 %vm2944_vm2, %v2943_v8 }
 0x556   : > { %2709 = vmatprep.subr.mxu1 %v2943_v8  ;;  %2706 = vmatprep.mubr.msk.f32.mxu0 %vm2944_vm2, %v2943_v8 }
 0x558   : > { %2702 = vmatmul.mubr.msk.f32.vlgmr.msra.gmra.mxu1 %vm610_vm3, %v1345_v16 }
 0x559   : > { %2711 = vmatprep.mubr.msk.f32.mxu1 %vm2944_vm2, %v2943_v8 }
 0x610   : > { %v3173_v17 = vpop.f32.mrf.mxu0 }
 0x612   : > { %v2688_v18 = vpop.f32.mrf.mxu0 }
 0x613   : > { %v1961_v18 = vld [vmem:[%s1958_s16 + $0x10] sm:$0xff] }
 0x614   : > { %v3175_v19 = vpop.f32.mrf.mxu1  ;;  %v1340_v20 = vpop.f32.mrf.mxu0 }
 0x615   : > { %v1422_v21 = vsel %vm610_vm3, %v1340_v20, -inf }
 0x616   : > { %v2693_v22 = vpop.f32.mrf.mxu1  ;;  %1423 = vmax.xlane.f32.xlu0 %v1422_v21  ;;  %v2698_v23 = vpop.f32.mrf.mxu0 }
 0x618   : > { %v1418_v24 = vpop.f32.mrf.mxu1 }
 0x619   : > { %v1425_v25 = vsel %vm610_vm3, %v1418_v24, -inf }
 0x61a   : > { %1426 = vmax.xlane.f32.xlu1 %v1425_v25  ;;  %v2703_v26 = vpop.f32.mrf.mxu1 }
 0x62b   : > { %1444 = vrot.lane.b32.xlu1 %v3095_v12, %s2952_s17 }
 0x62c   : > { %1520 = vrot.lane.b32.xlu0 %v3098_v13, %s2952_s17  ;;  %s2958_s17 = smov 24  }
 0x62f   : > { %1598 = vrot.lane.b32.xlu1 %v3095_v12, %s2953_s23 }
 0x633   : > { %1676 = vrot.lane.b32.xlu1 %v3098_v13, %s2953_s23  ;;  %s3251_s23 = scalar_lea.vmem %s3353_s7, %s2559_s30 }
 0x637   : > { %1674 = vrot.lane.b32.xlu1 %v3098_v13, %s2954_s24 }
 0x69f   : > { %v1424_v27 = vpop.xlane.xlu0 %1423 }
 0x6a0   : > { %v1428_v28 = vsub.f32 %v1340_v20, %v1424_v27  ;;  %v1959_v20 = vld [vmem:[%s1958_s16] sm:$0xff] }
 0x6a2   : > { %v1430_v29 = vmul.f32 1.442695, %v1428_v28 }
 0x6a3   : > { %v1427_v30 = vpop.xlane.xlu1 %1426  ;;  %v1521_v31 = vpop.permute.xlu0 %1520 }
 0x6a4   : > { %2867 = vpow2.f32 %v1430_v29  ;;  %v1429_v32 = vsub.f32 %v1418_v24, %v1427_v30  ;;  %2710 = vmatpush3.msra.mxu1 %v1521_v31 }
 0x6a5   : > { %2719 = vmatprep.subr.mxu1 %v2943_v8 }
 0x6a6   : > { %v1432_v33 = vmul.f32 1.442695, %v1429_v32 }
 0x6a7   : > { %v1445_v34 = vpop.permute.xlu1 %1444 }
 0x6a8   : > { %2869 = vpow2.f32 %v1432_v33  ;;  %2705 = vmatpush3.msra.mxu0 %v1445_v34 }
 0x6a9   : > { %2714 = vmatprep.subr.mxu0 %v2943_v8 }
 0x6ab   : > { %v1599_v41 = vpop.permute.xlu1 %1598 }
 0x6af   : > { %v1677_v47 = vpop.permute.xlu1 %1676 }
 0x6b1   : > { %v2868_v35 = vpop.eup %2867 }
 0x6b2   : > { %v1434_v36 = vsel %vm610_vm3, %v2868_v35, 0.0 }
 0x6b3   : > { %1435 = vadd.xlane.f32.xlu0 %v1434_v36  ;;  %v1675_v50 = vpop.permute.xlu1 %1674 }
 0x6b5   : > { %v2870_v37 = vpop.eup %2869 }
 0x6b6   : > { %v1437_v38 = vsel %vm610_vm3, %v2870_v37, 0.0 }
 0x6b7   : > { %1438 = vadd.xlane.f32.xlu0 %v1437_v38 }
 0x6cd   : > { %1596 = vrot.lane.b32.xlu0 %v3095_v12, %s2954_s24 }
 0x73c   : > { %v1436_v39 = vpop.xlane.xlu0 %1435 }
 0x73d   : > { %2871 = vrcp.f32 %v1436_v39 }
 0x740   : > { %v1439_v40 = vpop.xlane.xlu0 %1438 }
 0x741   : > { %2873 = vrcp.f32 %v1439_v40 }
 0x744   : > { %v1597_v49 = vpop.permute.xlu0 %1596 }
 0x74a   : > { %v2872_v42 = vpop.eup %2871 }
 0x74b   : > { %v1442_v43 = vmul.f32 %v2872_v42, %v2868_v35 }
 0x74d   : > { %2707 = vmatmul.mubr.msk.f32.vlgmr.msra.gmra.mxu0 %vm610_vm3, %v1442_v43 }
 0x74e   : > { %v2874_v45 = vpop.eup %2873  ;;  %2715 = vmatpush3.xpose.msk.msra.mxu0 %vm610_vm3, %v1599_v41  ;;  %2716 = vmatprep.mubr.msk.f32.mxu0 %vm2944_vm2, %v2943_v8 }
 0x74f   : > { %v1443_v48 = vmul.f32 %v2874_v45, %v2870_v37  ;;  %2724 = vmatprep.subr.mxu0 %v2943_v8 }
 0x751   : > { %2712 = vmatmul.mubr.msk.f32.vlgmr.msra.gmra.mxu1 %vm610_vm3, %v1443_v48  ;;  %2717 = vmatmul.mubr.msk.f32.vlgmr.msra.gmra.mxu0 %vm610_vm3, %v1597_v49 }
 0x752   : > { %2720 = vmatpush3.xpose.msk.msra.mxu1 %vm610_vm3, %v1677_v47  ;;  %2721 = vmatprep.mubr.msk.f32.mxu1 %vm2944_vm2, %v2943_v8 }
 0x753   : > { %2729 = vmatprep.subr.mxu1 %v2943_v8  ;;  %2726 = vmatprep.mubr.msk.f32.mxu0 %vm2944_vm2, %v2943_v8 }
 0x755   : > { %2722 = vmatmul.mubr.msk.f32.vlgmr.msra.gmra.mxu1 %vm610_vm3, %v1675_v50 }
 0x756   : > { %2731 = vmatprep.mubr.msk.f32.mxu1 %vm2944_vm2, %v2943_v8 }
 0x80d   : > { %v1516_v51 = vpop.f32.mrf.mxu0 }
 0x80f   : > { %v2708_v52 = vpop.f32.mrf.mxu0 }
 0x811   : > { %v1592_v53 = vpop.f32.mrf.mxu1  ;;  %v1670_v54 = vpop.f32.mrf.mxu0 }
 0x812   : > { %v1752_v55 = vsel %vm610_vm3, %v1670_v54, -inf }
 0x813   : > { %v2713_v56 = vpop.f32.mrf.mxu1  ;;  %1753 = vmax.xlane.f32.xlu0 %v1752_v55  ;;  %v2718_v57 = vpop.f32.mrf.mxu0  ;;  %v2104_v55 = vld [vmem:[%s2101_s29 + $0x10] sm:$0xff] }
 0x814   : > { %v2103_v56 = vld [vmem:[%s2101_s29 + $0x8] sm:$0xff]  ;;  %v2102_v57 = vld [vmem:[%s2101_s29] sm:$0xff] }
 0x815   : > { %v1748_v58 = vpop.f32.mrf.mxu1 }
 0x816   : > { %v1755_v59 = vsel %vm610_vm3, %v1748_v58, -inf }
 0x817   : > { %1756 = vmax.xlane.f32.xlu1 %v1755_v59  ;;  %v2723_v60 = vpop.f32.mrf.mxu1  ;;  %v2213_v59 = vld [vmem:[%s3251_s23 + $0x70] sm:$0xff] }
 0x818   : > { %v2212_v60 = vld [vmem:[%s3251_s23 + $0x68] sm:$0xff] }
 0x828   : > { %1774 = vrot.lane.b32.xlu1 %v3095_v12, %s2955_s25 }
 0x82c   : > { %1928 = vrot.lane.b32.xlu1 %v3173_v17, %s2956_s26 }
 0x830   : > { %1930 = vrot.lane.b32.xlu1 %v3175_v19, %s2956_s26  ;;  %v1960_v19 = vld [vmem:[%s1958_s16 + $0x8] sm:$0xff] }
 0x834   : > { %1938 = vrot.lane.b32.xlu1 %v1592_v53, %s2957_s28 }
 0x89c   : > { %v1754_v8 = vpop.xlane.xlu0 %1753 }
 0x89d   : > { %v1758_v61 = vsub.f32 %v1670_v54, %v1754_v8  ;;  %v2105_v54 = vld [vmem:[%s2101_s29 + $0x18] sm:$0xff]  ;;  %v2211_v8 = vld [vmem:[%s3251_s23 + $0x60] sm:$0xff]  ;;  %s2056_s29 = scalar_lea.vmem %s3356_s10, %s2933_s18 }
 0x89f   : > { %v1760_v62 = vmul.f32 1.442695, %v1758_v61  ;;  %v2210_v61 = vld [vmem:[%s3251_s23 + $0x58] sm:$0xff] }
 0x8a0   : > { %v1757_v63 = vpop.xlane.xlu1 %1756 }
 0x8a1   : > { %2875 = vpow2.f32 %v1760_v62  ;;  %v1759_v0 = vsub.f32 %v1748_v58, %v1757_v63  ;;  %v2214_v58 = vld [vmem:[%s3251_s23 + $0x78] sm:$0xff]  ;;  %v2209_v62 = vld [vmem:[%s3251_s23 + $0x50] sm:$0xff]  ;;  %v2208_v63 = vld [vmem:[%s3251_s23 + $0x48] sm:$0xff] }
 0x8a3   : > { %v1762_v1 = vmul.f32 1.442695, %v1759_v0  ;;  %v2207_v0 = vld [vmem:[%s3251_s23 + $0x40] sm:$0xff] }
 0x8a4   : > { %v1775_v3 = vpop.permute.xlu1 %1774 }
 0x8a5   : > { %2877 = vpow2.f32 %v1762_v1  ;;  %2725 = vmatpush3.msra.mxu0 %v1775_v3  ;;  %v2206_v1 = vld [vmem:[%s3251_s23 + $0x38] sm:$0xff]  ;;  %v2205_v3 = vld [vmem:[%s3251_s23 + $0x30] sm:$0xff] }
 0x8a6   : > { %2756 = vmatprep.subr.mxu0 %v2214_v58 }
 0x8a8   : > { %v1929_v25 = vpop.permute.xlu1 %1928 }
 0x8a9   : > { %v1950_v28 = vsel %vm610_vm3, %v3141_v44, %v1929_v25  ;;  %v2201_v25 = vld [vmem:[%s3251_s23 + $0x10] sm:$0xff] }
 0x8ac   : > { %v1931_v26 = vpop.permute.xlu1 %1930 }
 0x8ad   : > { %v1951_v33 = vsel %vm610_vm3, %v3143_v46, %v1931_v26  ;;  %v2200_v26 = vld [vmem:[%s3251_s23 + $0x8] sm:$0xff] }
 0x8ae   : > { %v2876_v4 = vpop.eup %2875 }
 0x8af   : > { %v1764_v12 = vsel %vm610_vm3, %v2876_v4, 0.0 }
 0x8b0   : > { %1765 = vadd.xlane.f32.xlu0 %v1764_v12  ;;  %v1939_v29 = vpop.permute.xlu1 %1938  ;;  %v2203_v12 = vld [vmem:[%s3251_s23 + $0x20] sm:$0xff] }
 0x8b1   : > { %v1954_v34 = vsel %vm1952_vm5, %v1951_v33, %v1939_v29 }
 0x8b2   : > { %v2878_v5 = vpop.eup %2877 }
 0x8b3   : > { %v1767_v6 = vsel %vm610_vm3, %v2878_v5, 0.0 }
 0x8b4   : > { %1768 = vadd.xlane.f32.xlu0 %v1767_v6 }
 0x8ca   : > { %1850 = vrot.lane.b32.xlu0 %v3098_v13, %s2955_s25  ;;  %v1962_v13 = vld [vmem:[%s1958_s16 + $0x18] sm:$0xff]  ;;  %s1963_s25 = scalar_lea.vmem %s3350_s4, %s2933_s18  ;;  %s2302_s16 = scalar_lea.vmem %s3358_s12, %s2933_s18 }
 0x8cb   : > { %v2551_v44 = vld [vmem:[%s1963_s25] ss:$0 sm:$0xff]  ;;  %s2054_s25 = scalar_lea.vmem %s3355_s9, %s2933_s18 }
 0x8ce   : > { %1936 = vrot.lane.b32.xlu0 %v1516_v51, %s2957_s28  ;;  %s2300_s28 = scalar_lea.vmem %s3357_s11, %s2933_s18 }
 0x939   : > { %v1766_v9 = vpop.xlane.xlu0 %1765 }
 0x93a   : > { %2879 = vrcp.f32 %v1766_v9 }
 0x93d   : > { %v1769_v10 = vpop.xlane.xlu0 %1768 }
 0x93e   : > { %2881 = vrcp.f32 %v1769_v10 }
 0x941   : > { %v1851_v11 = vpop.permute.xlu0 %1850 }
 0x942   : > { %2730 = vmatpush3.msra.mxu1 %v1851_v11 }
 0x943   : > { %2734 = vmatprep.subr.mxu1 %v1962_v13 }
 0x945   : > { %v1937_v27 = vpop.permute.xlu0 %1936 }
 0x946   : > { %v1953_v30 = vsel %vm1952_vm5, %v1950_v28, %v1937_v27  ;;  %v2199_v27 = vld [vmem:[%s3251_s23] sm:$0xff] }
 0x947   : > { %v2880_v14 = vpop.eup %2879 }
 0x948   : > { %v1772_v15 = vmul.f32 %v2880_v14, %v2876_v4  ;;  %v2204_v4 = vld [vmem:[%s3251_s23 + $0x28] sm:$0xff] }
 0x94a   : > { %2727 = vmatmul.mubr.msk.f32.vlgmr.msra.gmra.mxu0 %vm610_vm3, %v1772_v15 }
 0x94b   : > { %v2882_v16 = vpop.eup %2881  ;;  %2757 = vmatpush3.msra.mxu0 %v2214_v58 }
 0x94c   : > { %v1773_v17 = vmul.f32 %v2882_v16, %v2878_v5  ;;  %2758 = vmatprep.subr.mxu0 %v2213_v59  ;;  %v2554_v16 = vld [vmem:[%s2054_s25] ss:$0 sm:$0xff] }
 0x94d   : > { %2759 = vmatpush3.msra.mxu0 %v2213_v59  ;;  %v2561_v59 = vld [vmem:[%s2300_s28] ss:$0 sm:$0xff] }
 0x94e   : > { %2732 = vmatmul.mubr.msk.f32.vlgmr.msra.gmra.mxu1 %vm610_vm3, %v1773_v17  ;;  %2760 = vmatprep.subr.mxu0 %v2212_v60 }
 0x94f   : > { %2735 = vmatpush3.msra.mxu1 %v1962_v13  ;;  %2761 = vmatpush3.msra.mxu0 %v2212_v60  ;;  %v2555_v13 = vld [vmem:[%s2056_s29] ss:$0 sm:$0xff] }
 0x950   : > { %2736 = vmatprep.subr.mxu1 %v1961_v18  ;;  %2762 = vmatprep.subr.mxu0 %v2211_v8 }
 0x951   : > { %2737 = vmatpush3.msra.mxu1 %v1961_v18  ;;  %2763 = vmatpush3.msra.mxu0 %v2211_v8 }
 0x952   : > { %2738 = vmatprep.subr.mxu1 %v1960_v19  ;;  %2764 = vmatprep.subr.mxu0 %v2210_v61 }
 0x953   : > { %2739 = vmatpush3.msra.mxu1 %v1960_v19  ;;  %2765 = vmatpush3.msra.mxu0 %v2210_v61  ;;  %v2562_v61 = vld [vmem:[%s2302_s16] ss:$0 sm:$0xff] }
 0x954   : > { %2740 = vmatprep.subr.mxu1 %v1959_v20  ;;  %2766 = vmatprep.subr.mxu0 %v2209_v62 }
 0x955   : > { %2741 = vmatpush3.msra.mxu1 %v1959_v20  ;;  %2767 = vmatpush3.msra.mxu0 %v2209_v62 }
 0x956   : > { %2745 = vmatprep.subr.mxu1 %v2105_v54  ;;  %2768 = vmatprep.subr.mxu0 %v2208_v63 }
 0x957   : > { %2769 = vmatpush3.msra.mxu0 %v2208_v63 }
 0x958   : > { %2770 = vmatprep.subr.mxu0 %v2207_v0 }
 0x959   : > { %2771 = vmatpush3.msra.mxu0 %v2207_v0 }
 0x95a   : > { %2772 = vmatprep.subr.mxu0 %v2206_v1 }
 0x95b   : > { %2773 = vmatpush3.msra.mxu0 %v2206_v1 }
 0x95c   : > { %2774 = vmatprep.subr.mxu0 %v2205_v3 }
 0x95d   : > { %2775 = vmatpush3.msra.mxu0 %v2205_v3 }
 0x95e   : > { %2776 = vmatprep.subr.mxu0 %v2204_v4 }
 0x95f   : > { %2777 = vmatpush3.msra.mxu0 %v2204_v4 }
 0x960   : > { %2778 = vmatprep.subr.mxu0 %v2203_v12 }
 0x961   : > { %2779 = vmatpush3.msra.mxu0 %v2203_v12 }
 0xa0a   : > { %v1846_v21 = vpop.f32.mrf.mxu0 }
 0xa0b   : > { %1944 = vrot.lane.b32.xlu0 %v1846_v21, %s2958_s17 }
 0xa0c   : > { %v2728_v22 = vpop.f32.mrf.mxu0 }
 0xa0e   : > { %v1922_v23 = vpop.f32.mrf.mxu1 }
 0xa0f   : > { %1946 = vrot.lane.b32.xlu1 %v1922_v23, %s2958_s17  ;;  %s2106_s17 = scalar_lea.vmem %s3352_s6, %s2933_s18 }
 0xa10   : > { %v2733_v24 = vpop.f32.mrf.mxu1  ;;  %v2556_v28 = vld [vmem:[%s2106_s17] ss:$0 sm:$0xff] }
 0xa11   : > { %v2202_v24 = vld [vmem:[%s3251_s23 + $0x18] sm:$0xff]  ;;  %s2215_s23 = scalar_lea.vmem %s3354_s8, %s2933_s18 }
 0xa12   : > { %2780 = vmatprep.subr.mxu0 %v2202_v24 }
 0xa13   : > { %2781 = vmatpush3.msra.mxu0 %v2202_v24 }
 0xa14   : > { %2782 = vmatprep.subr.mxu0 %v2201_v25 }
 0xa15   : > { %2783 = vmatpush3.msra.mxu0 %v2201_v25 }
 0xa16   : > { %2784 = vmatprep.subr.mxu0 %v2200_v26 }
 0xa17   : > { %2785 = vmatpush3.msra.mxu0 %v2200_v26 }
 0xa18   : > { %2786 = vmatprep.subr.mxu0 %v2199_v27 }
 0xa19   : > { %2787 = vmatpush3.msra.mxu0 %v2199_v27 }
 0xa7d   : > { %v1945_v31 = vpop.permute.xlu0 %1944 }
 0xa7e   : > { %v1956_v32 = vsel %vm1955_vm4, %v1953_v30, %v1945_v31 }
 0xa7f   : > { %2742 = vmatprep.mubr.msk.f32.mxu1 %vm525_vm1, %v1956_v32 }
 0xa81   : > { %v1947_v35 = vpop.permute.xlu1 %1946 }
 0xa82   : > { %v1957_v36 = vsel %vm1955_vm4, %v1954_v34, %v1947_v35  ;;  %v2560_v35 = vld [vmem:[%s2215_s23] ss:$0 sm:$0xff] }
 0xa83   : > { %2743 = vmatmul.mubr.msk.f32.vlgmr.msra.gmra.mxu1 %vm525_vm1, %v1957_v36 }
 0xa84   : > { %2746 = vmatpush3.msra.mxu1 %v2105_v54 }
 0xa85   : > { %2747 = vmatprep.subr.mxu1 %v2104_v55 }
 0xa86   : > { %2748 = vmatpush3.msra.mxu1 %v2104_v55 }
 0xa87   : > { %2749 = vmatprep.subr.mxu1 %v2103_v56 }
 0xa88   : > { %2750 = vmatpush3.msra.mxu1 %v2103_v56 }
 0xa89   : > { %2751 = vmatprep.subr.mxu1 %v2102_v57 }
 0xa8a   : > { %2752 = vmatpush3.msra.mxu1 %v2102_v57 }
 0xb43   : > { %v2744_v37 = vpop.f32.mrf.mxu1 }
 0xb44   : > { %v2049_v38 = vadd.f32 %v2744_v37, %v2551_v44 }
 0xb45   : > { %v2043_v39 = vpop.f32.mrf.mxu1 }
 0xb46   : > { %v2044_v40 = vadd.f32 %v2551_v44, %v2043_v39  ;;  %v2053_v41 = vadd.f32 %v2049_v38, %v3081_v7 }
 0xb48   : > { %v2061_v42 = vsel %vm525_vm1, %v2053_v41, 0.0  ;;  %v2052_v46 = vadd.f32 %v2044_v40, %v3073_v2 }
 0xb49   : > { %2062 = vadd.xlane.f32.xlu1 %v2061_v42 }
 0xb4a   : > { %v2058_v43 = vsel %vm525_vm1, %v2052_v46, 0.0 }
 0xb4b   : > { %2059 = vadd.xlane.f32.xlu0 %v2058_v43 }
 0xbd2   : > { %v2063_v45 = vpop.xlane.xlu1 %2062 }
 0xbd3   : > { %v2066_v47 = vmul.f32 0.03125, %v2063_v45 }
 0xbd4   : > { %v2060_v48 = vpop.xlane.xlu0 %2059 }
 0xbd5   : > { %v2065_v49 = vmul.f32 0.03125, %v2060_v48  ;;  %v3233_v50 = vsub.f32 %v2053_v41, %v2066_v47 }
 0xbd7   : > { %v3235_v51 = vsub.f32 %v2052_v46, %v2065_v49  ;;  %v2070_v2 = vmul.f32 %v3233_v50, %v3233_v50 }
 0xbd9   : > { %v2069_v7 = vmul.f32 %v3235_v51, %v3235_v51  ;;  %v2074_v53 = vsel %vm525_vm1, %v2070_v2, 0.0 }
 0xbdb   : > { %v2071_v52 = vsel %vm525_vm1, %v2069_v7, 0.0 }
 0xbdc   : > { %2072 = vadd.xlane.f32.xlu0 %v2071_v52 }
 0xbe0   : > { %2075 = vadd.xlane.f32.xlu0 %v2074_v53 }
 0xc65   : > { %v2073_v5 = vpop.xlane.xlu0 %2072 }
 0xc66   : > { %v2077_v6 = vmul.f32 0.03125, %v2073_v5 }
 0xc68   : > { %v2079_v9 = vadd.f32 1e-05, %v2077_v6 }
 0xc69   : > { %v2076_v10 = vpop.xlane.xlu0 %2075 }
 0xc6a   : > { %2883 = vrsqrt.f32 %v2079_v9  ;;  %v2078_v11 = vmul.f32 0.03125, %v2076_v10 }
 0xc6c   : > { %v2080_v14 = vadd.f32 1e-05, %v2078_v11 }
 0xc6e   : > { %2885 = vrsqrt.f32 %v2080_v14 }
 0xc77   : > { %v2884_v15 = vpop.eup %2883 }
 0xc78   : > { %v2083_v17 = vmul.f32 %v2884_v15, %v3235_v51 }
 0xc7a   : > { %v2091_v18 = vmul.f32 %v2554_v16, %v2083_v17 }
 0xc7b   : > { %v2886_v19 = vpop.eup %2885 }
 0xc7c   : > { %v2084_v20 = vmul.f32 %v2886_v19, %v3233_v50  ;;  %v2099_v21 = vadd.f32 %v2555_v13, %v2091_v18 }
 0xc7e   : > { %v2092_v22 = vmul.f32 %v2554_v16, %v2084_v20  ;;  %2753 = vmatprep.mubr.msk.f32.mxu1 %vm525_vm1, %v2099_v21 }
 0xc80   : > { %v2100_v23 = vadd.f32 %v2555_v13, %v2092_v22 }
 0xc82   : > { %2754 = vmatmul.mubr.msk.f32.vlgmr.msra.gmra.mxu1 %vm525_vm1, %v2100_v23 }
 0xd42   : > { %v2755_v29 = vpop.f32.mrf.mxu1 }
 0xd43   : > { %v2192_v30 = vadd.f32 %v2755_v29, %v2556_v28 }
 0xd44   : > { %v2186_v31 = vpop.f32.mrf.mxu1 }
 0xd45   : > { %v2187_v32 = vadd.f32 %v2556_v28, %v2186_v31  ;;  %v2196_v34 = vmax.f32 %v2192_v30, 0.0 }
 0xd47   : > { %v2195_v33 = vmax.f32 %v2187_v32, 0.0 }
 0xd49   : > { %2788 = vmatprep.mubr.f32.mxu0 %v2195_v33 }
 0xd4a   : > { %2789 = vmatmul.mubr.f32.vlgmr.msra.gmra.mxu0 %v2196_v34 }
 0xe0a   : > { %v2790_v36 = vpop.f32.mrf.mxu0 }
 0xe0b   : > { %v2295_v44 = vadd.f32 %v2790_v36, %v2560_v35 }
 0xe0c   : > { %v2289_v37 = vpop.f32.mrf.mxu0 }
 0xe0d   : > { %v2290_v38 = vadd.f32 %v2560_v35, %v2289_v37  ;;  %v2299_v39 = vadd.f32 %v2295_v44, %v2100_v23 }
 0xe0f   : > { %v2307_v40 = vsel %vm525_vm1, %v2299_v39, 0.0  ;;  %v2298_v41 = vadd.f32 %v2290_v38, %v2099_v21 }
 0xe10   : > { %2308 = vadd.xlane.f32.xlu0 %v2307_v40 }
 0xe11   : > { %v2304_v42 = vsel %vm525_vm1, %v2298_v41, 0.0 }
 0xe12   : > { %2305 = vadd.xlane.f32.xlu1 %v2304_v42 }
 0xe99   : > { %v2309_v46 = vpop.xlane.xlu0 %2308 }
 0xe9a   : > { %v2311_v43 = vmul.f32 0.03125, %v2309_v46 }
 0xe9b   : > { %v2306_v45 = vpop.xlane.xlu1 %2305 }
 0xe9c   : > { %v2313_v47 = vsub.f32 %v2299_v39, %v2311_v43  ;;  %v2310_v48 = vmul.f32 0.03125, %v2306_v45 }
 0xe9e   : > { %v2312_v49 = vsub.f32 %v2298_v41, %v2310_v48  ;;  %v2315_v50 = vmul.f32 %v2313_v47, %v2313_v47 }
 0xea0   : > { %v2319_v51 = vsel %vm525_vm1, %v2315_v50, 0.0  ;;  %v2314_v7 = vmul.f32 %v2312_v49, %v2312_v49 }
 0xea1   : > { %2320 = vadd.xlane.f32.xlu0 %v2319_v51 }
 0xea2   : > { %v2316_v52 = vsel %vm525_vm1, %v2314_v7, 0.0 }
 0xea3   : > { %2317 = vadd.xlane.f32.xlu1 %v2316_v52 }
 0xf2a   : > { %v2321_v2 = vpop.xlane.xlu0 %2320 }
 0xf2b   : > { %v2323_v53 = vmul.f32 0.03125, %v2321_v2 }
 0xf2c   : > { %v2318_v54 = vpop.xlane.xlu1 %2317 }
 0xf2d   : > { %v2325_v55 = vadd.f32 1e-05, %v2323_v53  ;;  %v2322_v56 = vmul.f32 0.03125, %v2318_v54 }
 0xf2f   : > { %2887 = vrsqrt.f32 %v2325_v55  ;;  %v2324_v57 = vadd.f32 1e-05, %v2322_v56 }
 0xf31   : > { %2889 = vrsqrt.f32 %v2324_v57 }
 0xf3c   : > { %v2888_v58 = vpop.eup %2887 }
 0xf3d   : > { %v2329_v60 = vmul.f32 %v2888_v58, %v2313_v47 }
 0xf3e   : > { %v2890_v8 = vpop.eup %2889 }
 0xf3f   : > { %v2337_v62 = vmul.f32 %v2561_v59, %v2329_v60  ;;  %v2328_v63 = vmul.f32 %v2890_v8, %v2312_v49 }
 0xf41   : > { %v2345_v0 = vadd.f32 %v2562_v61, %v2337_v62  ;;  %v2336_v1 = vmul.f32 %v2561_v59, %v2328_v63  ;;  %2351 = sbr.rel (%p2563_p5) target bundleno = 4115 (0x1013), region = 88 }
 0xf43   : > { %2347 = vst.msk [vmem:[#allocation2 + $0x8] sm:$0xff] %vm525_vm1, %v2345_v0  ;;  %v2344_v3 = vadd.f32 %v2562_v61, %v2336_v1 }
 0xf45   : > { %2346 = vst.msk [vmem:[#allocation2] sm:$0xff] %vm525_vm1, %v2344_v3 }
 0xf46   : > { %v2357_v4 = vld [vmem:[%s3359_s13 + $0x18] sm:$0xff]  ;;  %v2959_v12 = vmov 0.0   ;;  %v2356_v5 = vld [vmem:[%s3359_s13 + $0x10] sm:$0xff]  ;;  %vm2960_vm6 = vmmov 0   ;;  %v2355_v6 = vld [vmem:[%s3359_s13 + $0x8] sm:$0xff]  ;;  %vm2438_vm7 = vcmask 254976  }
 0xf47   : > { %2791 = vmatprep.subr.mxu0 %v2959_v12  ;;  %2799 = vmatprep.mubr.msk.f32.mxu0 %vm2960_vm6, %v2959_v12  ;;  %v2354_v9 = vld [vmem:[%s3359_s13] sm:$0xff] }
 0xf48   : > { %2792 = vmatpush3.msra.mxu0 %v2357_v4  ;;  %v2564_v11 = vld [vmem:[%s3360_s14] ss:$0 sm:$0xff] }
 0xf49   : > { %2793 = vmatprep.subr.mxu0 %v2959_v12 }
 0xf4a   : > { %2794 = vmatpush3.msra.mxu0 %v2356_v5 }
 0xf4b   : > { %2795 = vmatprep.subr.mxu0 %v2959_v12 }
 0xf4c   : > { %2796 = vmatpush3.msra.mxu0 %v2355_v6  ;;  %v2353_v10 = vld [vmem:[#allocation2 + $0x7] ss:$8 sm:$0x3] }
 0xf4d   : > { %2797 = vmatprep.subr.mxu0 %v2959_v12 }
 0xf4e   : > { %2798 = vmatpush3.msra.mxu0 %v2354_v9 }
 0xf4f   : > { %2800 = vmatmul.mubr.msk.f32.vlgmr.msra.gmra.mxu0 %vm525_vm1, %v2353_v10 }
0x100f   : > { %v2434_v14 = vpop.f32.mrf.mxu0 }
0x1010   : > { %v2435_v15 = vadd.f32 %v2564_v11, %v2434_v14 }
0x1011   : > { %v2801_v16 = vpop.f32.mrf.mxu0 }
0x1012   : > { %2439 = vst.msk [vmem:[#allocation3] sm:$0x3] %vm2438_vm7, %v2435_v15 }
0x1013 PF: > { %p3322_p6 = scmp.eq.s32.totalorder %s2518_s21, 1  ;;  %s2961_s17 = smov [#allocation3]  }
0x1014   : > { %s2449_s27 = sshll.u32 %s2961_s17, 4  ;;  %s2450_s27 = int_to_ptr.vmem [resolvable:$true] %s2449_s27 }
0x1015   : > { %s2891_s24 = scalar_lea.vmem %s2450_s27, 32  ;;  %p2898_p10 = scmp.lt.s32.totalorder %s2450_s27, %s2450_s27 }
0x1016   : > { %p2892_p7 = scmp.ne.s32.totalorder %s2450_s27, %s2891_s24  ;;  %p2899_p11 = scmp.lt.s32.totalorder %s2891_s24, %s2891_s24 }
0x1018   : > { %p2893_p8 = pnand %p2892_p7, %p3322_p6  ;;  %p2900_p12 = por %p2899_p11, %p2898_p10 }
0x101a   : > { %p2894_p9 = pneg %p2893_p8 }
0x101c   : > { %p2901_p13 = pnand %p2900_p12, %p2894_p9 }
0x101e   : > { %2904 = shalt.err (!%p2901_p13)
}
0x101f   : > { %2803 = dma.vmem_to_hbm [thread:$0]  (%p3322_p6), %s2450_s27, 32, %s3361_s15, [#allocation4]  }
0x1020   : > { %2928 = dma.done.wait (%p3322_p6), [#allocation4], 32  }
0x1021   : > { %2930 = vsyncadd (%p3322_p6), [#allocation4], 4294967264 }
0x1022 PF: > { %s26_s20 = sadd.s32 1, %s2941_s20   ;;  %s3363_s18 = smov %s2937_s19 }
0x1023   : > { %p23_p0 = scmp.ge.s32.totalorder %s26_s20, 4   ;;  %s3364_s19 = smov %s3366_s22 }
0x1025   :  { %25 = sbr.rel (!%p23_p0) target bundleno = 2 (0x2), region = 129 }
0x102a   :  { %2462 = vsyncpa [#allocation4], 1 }
0x102b   :  { %2464 = vsyncpa [#allocation4 + $0x1], 1 }

</bundles_post_ra>
